<compile_context>
chip_gen: v5e
topology: v5e:2x2
jax: 0.10.0
libtpu: 0.0.40
codegen_flags: <defaults>
</compile_context>

<pallas_src>
import jax
import jax.numpy as jnp
import numpy as np
from jax.experimental import pallas as pl
from jax.experimental.pallas import tpu as pltpu


# ----------------------------------------------------------------------------
# Kernel: per row-tile distance + argmin + one-hot + gather + partial sums.
# ----------------------------------------------------------------------------
def _make_vq_kernel(m_total, tm, d_dim, n_tok):
    def kernel(zaug_ref, rhs_ref, emb_ref,
               zq_ref, enc_ref, idx_ref, cnt_ref, sse_ref):
        zaug = zaug_ref[...].astype(jnp.float32)              # (tm, D+1), last col = 1

        # distances up to a per-row constant:
        #   d = z @ (-2 E^T) + 1 * ||e||^2   -> one MXU matmul, (tm, N)
        d = jnp.dot(zaug, rhs_ref[...], preferred_element_type=jnp.float32)

        # first-occurrence argmin over the codebook (lane reductions only)
        d_min = jnp.min(d, axis=1, keepdims=True)             # (tm, 1)
        lane = jax.lax.broadcasted_iota(jnp.int32, d.shape, 1)
        idx = jnp.min(jnp.where(d == d_min, lane, n_tok),
                      axis=1, keepdims=True)                  # (tm, 1)

        # lane-dense one-hot encodings (exact 0/1, stored as bf16)
        enc = (lane == idx).astype(jnp.float32)               # (tm, N)
        enc_ref[...] = enc.astype(enc_ref.dtype)
        idx_ref[...] = idx

        # z_q = one_hot @ codebook  (exact gather of the selected codeword, on MXU)
        zq = jnp.dot(enc, emb_ref[...], preferred_element_type=jnp.float32)
        zq_ref[...] = zq.astype(zq_ref.dtype)

        # ---- in-kernel partial reductions (mask rows >= M: padding rows) ----
        row = (pl.program_id(0) * tm
               + jax.lax.broadcasted_iota(jnp.int32, (tm, 1), 0))
        valid = (row < m_total).astype(jnp.float32)           # (tm, 1)

        cnt_ref[...] = jnp.sum(enc * valid, axis=0,
                               keepdims=True).reshape(1, 1, n_tok)

        diff = zq - zaug[:, 0:d_dim]                           # (tm, D)
        sse_ref[...] = jnp.sum((diff * diff) * valid,
                               keepdims=True).reshape(1, 1, 1)
    return kernel


def _vq_pallas(z_flat, dist_rhs, emb, *, tm=512):
    """z_flat: (M, D) f32, dist_rhs: (D+1, N) f32, emb: (N, D) f32.

    Returns (z_q (M,D) f32, encodings (M,N) bf16, idx (M,) i32,
             counts (N,) f32, sse scalar f32)."""
    M, D = z_flat.shape
    N, D2 = emb.shape
    assert D == D2 and dist_rhs.shape == (D + 1, N)

    # Row tile: big tiles amortize per-step overhead, but keep >= 2 grid steps
    # when the problem allows so both v7x TensorCores get work.
    while tm > 128 and pl.cdiv(M, tm) < 2:
        tm //= 2
    g = pl.cdiv(M, tm)
    Mp = g * tm

    # Append a ones column (folds the ||e||^2 bias into the MXU matmul), pad rows.
    z_aug = jnp.concatenate([z_flat, jnp.ones((M, 1), z_flat.dtype)], axis=1)
    if Mp != M:
        z_aug = jnp.pad(z_aug, ((0, Mp - M), (0, 0)))

    kernel = _make_vq_kernel(M, tm, D, N)

    zq, enc, idx, cnt, sse = pl.pallas_call(
        kernel,
        out_shape=(
            jax.ShapeDtypeStruct((Mp, D), jnp.float32),     # z_q rows
            jax.ShapeDtypeStruct((Mp, N), jnp.bfloat16),    # one-hot encodings
            jax.ShapeDtypeStruct((Mp, 1), jnp.int32),       # encoding indices
            jax.ShapeDtypeStruct((g, 1, N), jnp.float32),   # per-tile one-hot col sums
            jax.ShapeDtypeStruct((g, 1, 1), jnp.float32),   # per-tile sum((zq-z)^2)
        ),
        grid=(g,),
        in_specs=[
            pl.BlockSpec((tm, D + 1), lambda i: (i, 0)),    # z rows (+ones col), tiled
            pl.BlockSpec((D + 1, N), lambda i: (0, 0)),     # [-2E^T ; ||e||^2] resident
            pl.BlockSpec((N, D), lambda i: (0, 0)),         # codebook resident
        ],
        out_specs=(
            pl.BlockSpec((tm, D), lambda i: (i, 0)),
            pl.BlockSpec((tm, N), lambda i: (i, 0)),
            pl.BlockSpec((tm, 1), lambda i: (i, 0)),
            pl.BlockSpec((1, 1, N), lambda i: (i, 0, 0)),
            pl.BlockSpec((1, 1, 1), lambda i: (i, 0, 0)),
        ),
        compiler_params=pltpu.CompilerParams(
            dimension_semantics=("parallel",)),
    )(z_aug, dist_rhs, emb)

    counts = jnp.sum(cnt[:, 0, :], axis=0)     # (N,)  tiny (g,N) reduce
    sse_total = jnp.sum(sse)                   # scalar
    return zq[:M], enc[:M], idx[:M, 0], counts, sse_total


# ----------------------------------------------------------------------------
# Module wrapper (forward-pass semantics of the PyTorch VectorQuantizer).
# ----------------------------------------------------------------------------
class VectorQuantizer:
    def __init__(self, num_tokens, codebook_dim, beta, normalized=False,
                 contrast=False, seed=0):
        self.codebook_dim = codebook_dim
        self.num_tokens = num_tokens
        self.beta = beta
        # torch nn.Embedding default init: N(0, 1)
        self._embedding = jax.random.normal(
            jax.random.PRNGKey(seed), (num_tokens, codebook_dim), jnp.float32)
        self._refresh_codebook_cache()

    # Cache the distance-matmul RHS so e^T / ||e||^2 aren't recomputed per call.
    @property
    def embedding(self):
        return self._embedding

    @embedding.setter
    def embedding(self, value):
        self._embedding = jnp.asarray(value, jnp.float32)
        self._refresh_codebook_cache()

    def _refresh_codebook_cache(self):
        emb = self._embedding
        e_sq = jnp.sum(emb * emb, axis=1)[None, :]                   # (1, N)
        self._dist_rhs = jnp.concatenate([(-2.0 * emb).T, e_sq], 0)  # (D+1, N)

    def __call__(self, z_nchw):
        B, C, H, W = z_nchw.shape
        assert C == self.codebook_dim
        # rearrange 'b c h w -> b h w c' then flatten to (M, D)
        z = jnp.transpose(z_nchw, (0, 2, 3, 1))
        z_flat = z.reshape(-1, C)
        M = z_flat.shape[0]

        zq_flat, encodings, encoding_indices, counts, sse = _vq_pallas(
            z_flat, self._dist_rhs, self._embedding)

        # loss = beta * mse(z_q.detach(), z) + mse(z_q, z.detach())  (forward value)
        mse = sse / (M * C)
        loss = self.beta * mse + mse

        avg_probs = counts / M
        perplexity = jnp.exp(-jnp.sum(avg_probs * jnp.log(avg_probs + 1e-10)))

        # TODO(synk): the straight-through estimator (z + (z_q - z).detach()) and
        # the .detach() split in the loss are autograd-only; forward values match.
        # Note: `encodings` is returned as bfloat16 (exact 0/1) instead of f32.
        z_q = zq_flat.reshape(B, H, W, C)
        z_q_out = jnp.transpose(z_q, (0, 3, 1, 2))
        return z_q_out, loss, (perplexity, encodings, encoding_indices)


# ----------------------------------------------------------------------------
# Pure-JAX reference (mirrors the torch forward) for correctness verification.
# ----------------------------------------------------------------------------
def _ref_vq(emb, beta, z_nchw):
    z = jnp.transpose(z_nchw, (0, 2, 3, 1))
    zf = z.reshape(-1, emb.shape[1])
    d = (zf ** 2).sum(1, keepdims=True) + (emb ** 2).sum(1) - 2.0 * zf @ emb.T
    idx = jnp.argmin(d, axis=1).astype(jnp.int32)
    zq_flat = emb[idx]
    enc = jax.nn.one_hot(idx, emb.shape[0], dtype=z.dtype)
    avg = jnp.mean(enc, axis=0)
    perp = jnp.exp(-jnp.sum(avg * jnp.log(avg + 1e-10)))
    mse = jnp.mean((zq_flat - zf) ** 2)
    loss = beta * mse + mse
    zq = jnp.transpose(zq_flat.reshape(z.shape), (0, 3, 1, 2))
    return zq, loss, perp, enc, idx


def _quantize_eighths(x):
    # Snap values to multiples of 1/8 (exactly representable in f32) so the
    # kernel's MXU distance computation and the reference are bit-exact and the
    # argmin comparison is deterministic.
    return jnp.round(x * 8.0) / 8.0


if __name__ == "__main__":
    key = jax.random.PRNGKey(0)
    kx1, kx2 = jax.random.split(key)

    num_tokens, codebook_dim, beta = 128, 4, 0.25

    vq = VectorQuantizer(num_tokens, codebook_dim, beta, seed=1)
    vq.embedding = _quantize_eighths(vq.embedding)   # property setter refreshes cache

    def check(x):
        z_q, loss, (perp, enc, idx) = vq(x)
        jax.block_until_ready(z_q)
        r_zq, r_loss, r_perp, r_enc, r_idx = _ref_vq(vq.embedding, beta, x)
        np.testing.assert_array_equal(np.asarray(idx), np.asarray(r_idx))
        np.testing.assert_array_equal(
            np.asarray(enc).astype(np.float32), np.asarray(r_enc))
        np.testing.assert_allclose(np.asarray(z_q), np.asarray(r_zq),
                                   rtol=1e-6, atol=1e-6)
        np.testing.assert_allclose(float(loss), float(r_loss),
                                   rtol=1e-5, atol=1e-6)
        np.testing.assert_allclose(float(perp), float(r_perp),
                                   rtol=1e-5, atol=1e-6)
        assert z_q.shape == x.shape
        assert enc.shape == (x.shape[0] * x.shape[2] * x.shape[3], num_tokens)

    # main case: B=2, C=4, 16x16 (M = 512 -> two 256-row tiles, both TCs busy)
    x1 = _quantize_eighths(
        jax.random.normal(kx1, (2, 4, 16, 16), dtype=jnp.float32))
    check(x1)

    # ragged case exercising the M-padding + row-mask path (M = 100 -> padded)
    x2 = _quantize_eighths(
        jax.random.normal(kx2, (1, 4, 10, 10), dtype=jnp.float32))
    check(x2)

    print("KERNEL_OK")
</pallas_src>

<mosaic_0001>
module attributes {stable_mosaic.version = 11 : i64} {
  func.func @kernel(%arg0: i32, %arg1: memref<256x5xf32, #tpu.memory_space<vmem>>, %arg2: memref<5x128xf32, #tpu.memory_space<vmem>>, %arg3: memref<128x4xf32, #tpu.memory_space<vmem>>, %arg4: memref<256x4xf32, #tpu.memory_space<vmem>>, %arg5: memref<256x128xbf16, #tpu.memory_space<vmem>>, %arg6: memref<256x1xi32, #tpu.memory_space<vmem>>, %arg7: memref<1x1x128xf32, #tpu.memory_space<vmem>>, %arg8: memref<1x1x1xf32, #tpu.memory_space<vmem>>) attributes {dimension_semantics = [#tpu.dimension_semantics<parallel>], iteration_bounds = array<i64: 2>, scalar_prefetch = 0 : i64, scratch_operands = 0 : i64, tpu.core_type = #tpu.core_type<tc>, window_params = [{transform_indices = @transform_0, window_bounds = array<i64: 256, 5>}, {pipeline_mode = #tpu.pipeline_mode<synchronous>, transform_indices = @transform_1, window_bounds = array<i64: 5, 128>}, {pipeline_mode = #tpu.pipeline_mode<synchronous>, transform_indices = @transform_2, window_bounds = array<i64: 128, 4>}, {transform_indices = @transform_3, window_bounds = array<i64: 256, 4>}, {transform_indices = @transform_4, window_bounds = array<i64: 256, 128>}, {transform_indices = @transform_5, window_bounds = array<i64: 256, 1>}, {transform_indices = @transform_6, window_bounds = array<i64: 1, 1, 128>}, {transform_indices = @transform_7, window_bounds = array<i64: 1, 1, 1>}]} {
    %c0 = arith.constant 0 : index
    %c0_0 = arith.constant 0 : index
    %0 = vector.load %arg1[%c0, %c0_0] : memref<256x5xf32, #tpu.memory_space<vmem>>, vector<256x5xf32>
    %c0_1 = arith.constant 0 : index
    %c0_2 = arith.constant 0 : index
    %1 = vector.load %arg2[%c0_1, %c0_2] : memref<5x128xf32, #tpu.memory_space<vmem>>, vector<5x128xf32>
    %cst = arith.constant dense<0.000000e+00> : vector<256x128xf32>
    %2 = tpu.matmul %0, %1, %cst {dimension_numbers = #tpu.dot_dimension_numbers<[1], [0], [0], [1], [0, 0, 1, 1], [], []>} : vector<256x5xf32>, vector<5x128xf32>, vector<256x128xf32> -> vector<256x128xf32>
    %cst_3 = arith.constant dense<0x7F800000> : vector<256xf32>
    %3 = vector.multi_reduction <minimumf>, %2, %cst_3 [1] : vector<256x128xf32> to vector<256xf32>
    %4 = vector.shape_cast %3 : vector<256xf32> to vector<256x1xf32>
    %5 = tpu.iota {dimensions = array<i32: 1>} : vector<256x128xi32>
    %6 = vector.broadcast %4 : vector<256x1xf32> to vector<256x128xf32>
    %7 = arith.cmpf oeq, %2, %6 : vector<256x128xf32>
    %c128_i32 = arith.constant 128 : i32
    %8 = vector.broadcast %c128_i32 : i32 to vector<256x128xi32>
    %9 = arith.select %7, %5, %8 : vector<256x128xi1>, vector<256x128xi32>
    %cst_4 = arith.constant dense<2147483647> : vector<256xi32>
    %10 = vector.multi_reduction <minsi>, %9, %cst_4 [1] : vector<256x128xi32> to vector<256xi32>
    %11 = vector.shape_cast %10 : vector<256xi32> to vector<256x1xi32>
    %12 = vector.broadcast %11 : vector<256x1xi32> to vector<256x128xi32>
    %13 = arith.cmpi eq, %5, %12 : vector<256x128xi32>
    %14 = arith.extui %13 : vector<256x128xi1> to vector<256x128xi32>
    %15 = arith.sitofp %14 : vector<256x128xi32> to vector<256x128xf32>
    %16 = arith.truncf %15 : vector<256x128xf32> to vector<256x128xbf16>
    %c0_5 = arith.constant 0 : index
    %c0_6 = arith.constant 0 : index
    %17 = vector.load %arg5[%c0_5, %c0_6] : memref<256x128xbf16, #tpu.memory_space<vmem>>, vector<256x128xbf16>
    tpu.vector_store %arg5[%c0_5, %c0_6], %16 {strides = array<i32>} : memref<256x128xbf16, #tpu.memory_space<vmem>>, vector<256x128xbf16>,
    %c0_7 = arith.constant 0 : index
    %c0_8 = arith.constant 0 : index
    %18 = vector.load %arg6[%c0_7, %c0_8] : memref<256x1xi32, #tpu.memory_space<vmem>>, vector<256x1xi32>
    tpu.vector_store %arg6[%c0_7, %c0_8], %11 {strides = array<i32>} : memref<256x1xi32, #tpu.memory_space<vmem>>, vector<256x1xi32>,
    %c0_9 = arith.constant 0 : index
    %c0_10 = arith.constant 0 : index
    %19 = vector.load %arg3[%c0_9, %c0_10] : memref<128x4xf32, #tpu.memory_space<vmem>>, vector<128x4xf32>
    %cst_11 = arith.constant dense<0.000000e+00> : vector<256x4xf32>
    %20 = tpu.matmul %15, %19, %cst_11 {dimension_numbers = #tpu.dot_dimension_numbers<[1], [0], [0], [1], [0, 0, 1, 1], [], []>} : vector<256x128xf32>, vector<128x4xf32>, vector<256x4xf32> -> vector<256x4xf32>
    %c0_12 = arith.constant 0 : index
    %c0_13 = arith.constant 0 : index
    %21 = vector.load %arg4[%c0_12, %c0_13] : memref<256x4xf32, #tpu.memory_space<vmem>>, vector<256x4xf32>
    tpu.vector_store %arg4[%c0_12, %c0_13], %20 {strides = array<i32>} : memref<256x4xf32, #tpu.memory_space<vmem>>, vector<256x4xf32>,
    %c256_i32 = arith.constant 256 : i32
    %22 = arith.muli %arg0, %c256_i32 : i32
    %23 = tpu.iota {dimensions = array<i32: 0>} : vector<256x1xi32>
    %24 = vector.broadcast %22 : i32 to vector<256x1xi32>
    %25 = arith.addi %24, %23 : vector<256x1xi32>
    %c512_i32 = arith.constant 512 : i32
    %26 = vector.broadcast %c512_i32 : i32 to vector<256x1xi32>
    %27 = arith.cmpi slt, %25, %26 : vector<256x1xi32>
    %28 = arith.extui %27 : vector<256x1xi1> to vector<256x1xi32>
    %29 = arith.sitofp %28 : vector<256x1xi32> to vector<256x1xf32>
    %30 = vector.broadcast %29 : vector<256x1xf32> to vector<256x128xf32>
    %31 = arith.mulf %15, %30 : vector<256x128xf32>
    %cst_14 = arith.constant dense<0.000000e+00> : vector<128xf32>
    %32 = vector.multi_reduction <add>, %31, %cst_14 [0] : vector<256x128xf32> to vector<128xf32>
    %33 = vector.shape_cast %32 : vector<128xf32> to vector<1x128xf32>
    %34 = vector.shape_cast %33 : vector<1x128xf32> to vector<1x1x128xf32>
    %c0_15 = arith.constant 0 : index
    %c0_16 = arith.constant 0 : index
    %c0_17 = arith.constant 0 : index
    %35 = vector.load %arg7[%c0_15, %c0_16, %c0_17] : memref<1x1x128xf32, #tpu.memory_space<vmem>>, vector<1x1x128xf32>
    tpu.vector_store %arg7[%c0_15, %c0_16, %c0_17], %34 {strides = array<i32>} : memref<1x1x128xf32, #tpu.memory_space<vmem>>, vector<1x1x128xf32>,
    %36 = vector.extract_strided_slice %0 {offsets = [0, 0], sizes = [256, 4], strides = [1, 1]} : vector<256x5xf32> to vector<256x4xf32>
    %37 = arith.subf %20, %36 : vector<256x4xf32>
    %38 = arith.mulf %37, %37 : vector<256x4xf32>
    %39 = vector.broadcast %29 : vector<256x1xf32> to vector<256x4xf32>
    %40 = arith.mulf %38, %39 : vector<256x4xf32>
    %41 = vector.shape_cast %40 : vector<256x4xf32> to vector<1x256x4xf32>
    %cst_18 = arith.constant dense<0.000000e+00> : vector<1xf32>
    %42 = vector.multi_reduction <add>, %41, %cst_18 [1, 2] : vector<1x256x4xf32> to vector<1xf32>
    %43 = vector.shape_cast %42 : vector<1xf32> to vector<1x1x1xf32>
    %44 = vector.extract %43[0, 0, 0] : f32 from vector<1x1x1xf32>
    %45 = vector.broadcast %44 : f32 to vector<1x1xf32>
    %46 = vector.shape_cast %45 : vector<1x1xf32> to vector<1x1x1xf32>
    %c0_19 = arith.constant 0 : index
    %c0_20 = arith.constant 0 : index
    %c0_21 = arith.constant 0 : index
    %47 = vector.load %arg8[%c0_19, %c0_20, %c0_21] : memref<1x1x1xf32, #tpu.memory_space<vmem>>, vector<1x1x1xf32>
    tpu.vector_store %arg8[%c0_19, %c0_20, %c0_21], %46 {strides = array<i32>} : memref<1x1x1xf32, #tpu.memory_space<vmem>>, vector<1x1x1xf32>,
    return
  }
  func.func @transform_0(%arg0: i32) -> (i32, i32) {
    %c0_i32 = arith.constant 0 : i32
    %c0_i32_0 = arith.constant 0 : i32
    return %arg0, %c0_i32 : i32, i32
  }
  func.func @transform_1(%arg0: i32) -> (i32, i32) {
    %c0_i32 = arith.constant 0 : i32
    %c0_i32_0 = arith.constant 0 : i32
    %c0_i32_1 = arith.constant 0 : i32
    return %c0_i32, %c0_i32_0 : i32, i32
  }
  func.func @transform_2(%arg0: i32) -> (i32, i32) {
    %c0_i32 = arith.constant 0 : i32
    %c0_i32_0 = arith.constant 0 : i32
    %c0_i32_1 = arith.constant 0 : i32
    return %c0_i32, %c0_i32_0 : i32, i32
  }
  func.func @transform_3(%arg0: i32) -> (i32, i32) {
    %c0_i32 = arith.constant 0 : i32
    %c0_i32_0 = arith.constant 0 : i32
    return %arg0, %c0_i32 : i32, i32
  }
  func.func @transform_4(%arg0: i32) -> (i32, i32) {
    %c0_i32 = arith.constant 0 : i32
    %c0_i32_0 = arith.constant 0 : i32
    return %arg0, %c0_i32 : i32, i32
  }
  func.func @transform_5(%arg0: i32) -> (i32, i32) {
    %c0_i32 = arith.constant 0 : i32
    %c0_i32_0 = arith.constant 0 : i32
    return %arg0, %c0_i32 : i32, i32
  }
  func.func @transform_6(%arg0: i32) -> (i32, i32, i32) {
    %c0_i32 = arith.constant 0 : i32
    %c0_i32_0 = arith.constant 0 : i32
    %c0_i32_1 = arith.constant 0 : i32
    return %arg0, %c0_i32, %c0_i32_0 : i32, i32, i32
  }
  func.func @transform_7(%arg0: i32) -> (i32, i32, i32) {
    %c0_i32 = arith.constant 0 : i32
    %c0_i32_0 = arith.constant 0 : i32
    %c0_i32_1 = arith.constant 0 : i32
    return %arg0, %c0_i32, %c0_i32_0 : i32, i32, i32
  }
}

</mosaic_0001>

<bundles_post_ra>
// kernel: tpu_custom_call.1
= control target key start
LH: loop header
LB: loop body
LE: loop exit
PB: predicated region body
PF: predicated region fallthrough
CT: control target
= control target key end

     0   :  { %s4207_s0 = inlined_call_operand.vmem [shape: f32[512,5], index: 0, kind: input, shape index: {}]   ;;  %s4208_s1 = inlined_call_operand.vmem [shape: f32[5,128], index: 1, kind: input, shape index: {}]   ;;  %s4209_s2 = inlined_call_operand.vmem [shape: f32[128,4], index: 2, kind: input, shape index: {}]   ;;  %s4210_s3 = inlined_call_operand.vmem [shape: f32[512,4], index: 3, kind: output, shape index: {0}]   ;;  %s4211_s4 = inlined_call_operand.hbm [shape: bf16[512,128], index: 4, kind: output, shape index: {1}]   ;;  %s4212_s5 = inlined_call_operand.vmem [shape: s32[512,1], index: 5, kind: output, shape index: {2}]   ;;  %s4213_s6 = inlined_call_operand.hbm [shape: f32[2,1,128], index: 6, kind: output, shape index: {3}]   ;;  %s4214_s7 = inlined_call_operand.vmem [shape: f32[2,1,1], index: 7, kind: output, shape index: {4}]  }
   0x1   :  { %4230 = sst [smem:[#allocation17_spill]] %s4207_s0 }
   0x2   :  { %4231 = sst [smem:[#allocation18_spill]] %s4208_s1 }
   0x3   :  { %4232 = sst [smem:[#allocation19_spill]] %s4209_s2 }
   0x4   :  { %4233 = sst [smem:[#allocation20_spill]] %s4210_s3 }
   0x5   :  { %13 = vsyncpa [#allocation3], 0 }
   0x6   :  { %15 = vsyncpa [#allocation3 + $0x1], 0 }
   0x7   :  { %16 = vsyncpa [#allocation5], 0 }
   0x8   :  { %18 = vsyncpa [#allocation5 + $0x1], 0  ;;  %s2589_s24 = smov 0   ;;  %s2591_s25 = smov 0  }
   0x9   :  { %s2593_s26 = smov 0   ;;  %s2595_s27 = smov 0  }
   0xa LB: > { %s2610_s28 = sadd.s32 4294967295, %s2543_s27   ;;  %s2124_s29 = sadd.s32 4294967294, %s2543_s27   ;;  %s2543_s27 = sphi %s2595_s27, %s4265_s27   ;;  %s2539_s26 = sphi %s2593_s26, %s4264_s26   ;;  %s2535_s25 = sphi %s2591_s25, %s4263_s25   ;;  %s2531_s24 = sphi %s2589_s24, %s4262_s24  }
   0xb   : > { %s2614_s30 = sadd.s32 1, %s2543_s27   ;;  %s125_s8 = sadd.s32 1, %s2539_s26 }
   0xc   : > { %s122_s9 = ssub.s32 %s2543_s27, %s2614_s30  ;;  %p135_p0 = scmp.ne.s32.totalorder %s2539_s26, %s2535_s25 }
   0xd   : > { %p123_p1 = scmp.eq.s32.totalorder %s122_s9, 0  ;;  %p136_p2 = scmp.eq.s32.totalorder %s2610_s28, 1 }
   0xe   : > { %p141_p3 = scmp.ne.s32.totalorder %s2535_s25, %s2531_s24  ;;  %p142_p4 = scmp.eq.s32.totalorder %s2124_s29, 1 }
   0xf   : > { %s2625_s10 = scalar_select %p123_p1, %s2539_s26, %s125_s8  }
  0x10   : > { %p2627_p5 = por %p136_p2, %p135_p0  ;;  %p2631_p6 = por %p142_p4, %p141_p3 }
  0x11   : > { %p2127_p7 = scmp.ge.s32.totalorder %s2543_s27, 1  ;;  %p253_p8 = scmp.lt.s32.totalorder %s2543_s27, 3 }
  0x13   : > { %p254_p9 = pnand %p2127_p7, %p253_p8 }
  0x15   : > { %257 = sbr.rel (%p254_p9) target bundleno = 1211 (0x4bb), region = 32 }
  0x1a   : > { %s4236_s1 = sld [smem:[#allocation18_spill]]  ;;  %vm454_vm0 = vcmask 1044480   ;;  %s2129_s15 = sshll.u32 %s2610_s28, 5  ;;  %vm357_vm1 = vcmask 39936   ;;  %v4215_v57 = vlaneseq }
  0x1b   : > { %p303_p10 = scmp.lt.s32.totalorder %s2129_s15, 63  ;;  %s4237_s0 = sld [smem:[#allocation17_spill]] }
  0x1c   : > { %v2786_v59 = vand.u32 127, %v4215_v57  ;;  %s4243_s2 = sld [smem:[#allocation19_spill]]  ;;  %s2232_s18 = sshll.u32 %s2610_s28, 8 }
  0x1d   : > { %s4267_s15 = smov (!%p303_p10, %s2129_s15), 63  ;;  %s3207_s20 = sand.u32 1, %s2535_s25  }
  0x1e   : > { %s2641_s16 = sshll.u32 %s4267_s15, 3  ;;  %s2128_s21 = sshll.u32 %s3207_s20, 7 }
  0x1f   : > { %s3171_s17 = scalar_lea.vmem %s4212_s5, %s2641_s16  ;;  %s3244_s22 = scalar_lea.vmem [#allocation2], %s2128_s21 }
  0x20   : > { %v356_v0 = vld [vmem:[%s4236_s1] sm:$0x1f]  ;;  %s4253_s3 = sld [smem:[#allocation20_spill]]  ;;  %s2270_s9 = sshll.u32 %s2610_s28, 7 }
  0x21   : > { %2135 = vmatpush.msk.msra.mxu0 %vm454_vm0, %v356_v0  ;;  %2334 = vmatpush.msk.msra.mxu3 %vm454_vm0, %v356_v0  ;;  %s2647_s19 = scalar_lea.vmem %s4237_s0, %s2641_s16  ;;  %s1941_s15 = scalar_lea.hbm %s4211_s4, %s2270_s9 }
  0x22   : > { %v324_v1 = vld [vmem:[%s2647_s19] sm:$0xff]  ;;  %v342_v2 = vld [vmem:[%s2647_s19 + $0x90] sm:$0xff]  ;;  %v325_v3 = vld [vmem:[%s2647_s19 + $0x8] sm:$0xff]  ;;  %s1942_s21 = sshll.u32 %s3244_s22, 4  ;;  %s1944_s23 = sshll.u32 %s1941_s15, 4  ;;  %s1943_s21 = int_to_ptr.vmem [resolvable:$true] %s1942_s21  ;;  %s1945_s23 = int_to_ptr.hbm [resolvable:$true] %s1944_s23 }
  0x23   : > { %2136 = vmatmul.msk.f32.vlgmr.msra.gmra.mxu0 %vm357_vm1, %v324_v1  ;;  %2154 = vmatmul.msk.f32.vlgmr.msra.gmra.mxu3 %vm357_vm1, %v342_v2  ;;  %v343_v4 = vld [vmem:[%s2647_s19 + $0x98] sm:$0xff]  ;;  %v326_v5 = vld [vmem:[%s2647_s19 + $0x10] sm:$0xff]  ;;  %v344_v6 = vld [vmem:[%s2647_s19 + $0xa0] sm:$0xff]  ;;  %s1914_s29 = scalar_lea.sflag [#allocation3], %s3207_s20  ;;  %s2469_s9 = scalar_lea.hbm %s4211_s4, 256 }
  0x24   : > { %v327_v7 = vld [vmem:[%s2647_s19 + $0x18] sm:$0xff]  ;;  %v345_v8 = vld [vmem:[%s2647_s19 + $0xa8] sm:$0xff]  ;;  %v328_v9 = vld [vmem:[%s2647_s19 + $0x20] sm:$0xff] }
  0x25   : > { %v346_v10 = vld [vmem:[%s2647_s19 + $0xb0] sm:$0xff]  ;;  %v329_v11 = vld [vmem:[%s2647_s19 + $0x28] sm:$0xff]  ;;  %v347_v12 = vld [vmem:[%s2647_s19 + $0xb8] sm:$0xff] }
  0x26   : > { %v330_v13 = vld [vmem:[%s2647_s19 + $0x30] sm:$0xff]  ;;  %v348_v14 = vld [vmem:[%s2647_s19 + $0xc0] sm:$0xff]  ;;  %v331_v15 = vld [vmem:[%s2647_s19 + $0x38] sm:$0xff]  ;;  %s3422_s8 = scalar_lea.vmem %s4253_s3, %s2641_s16  ;;  %s4229_s16 = scalar_lea.vmem [#allocation4], %s3207_s20 }
  0x27   : > { %v349_v16 = vld [vmem:[%s2647_s19 + $0xc8] sm:$0xff]  ;;  %v332_v17 = vld [vmem:[%s2647_s19 + $0x40] sm:$0xff]  ;;  %v350_v18 = vld [vmem:[%s2647_s19 + $0xd0] sm:$0xff] }
  0x28   : > { %v333_v19 = vld [vmem:[%s2647_s19 + $0x48] sm:$0xff]  ;;  %v351_v20 = vld [vmem:[%s2647_s19 + $0xd8] sm:$0xff]  ;;  %v334_v21 = vld [vmem:[%s2647_s19 + $0x50] sm:$0xff] }
  0x29   : > { %v352_v22 = vld [vmem:[%s2647_s19 + $0xe0] sm:$0xff]  ;;  %v335_v23 = vld [vmem:[%s2647_s19 + $0x58] sm:$0xff]  ;;  %v353_v24 = vld [vmem:[%s2647_s19 + $0xe8] sm:$0xff] }
  0x2a   : > { %v336_v25 = vld [vmem:[%s2647_s19 + $0x60] sm:$0xff]  ;;  %v337_v26 = vld [vmem:[%s2647_s19 + $0x68] sm:$0xff]  ;;  %v338_v27 = vld [vmem:[%s2647_s19 + $0x70] sm:$0xff] }
  0x2b   : > { %2137 = vmatmul.msk.f32.gmra.mxu0 %vm357_vm1, %v325_v3  ;;  %2155 = vmatmul.msk.f32.gmra.mxu3 %vm357_vm1, %v343_v4  ;;  %v339_v28 = vld [vmem:[%s2647_s19 + $0x78] sm:$0xff]  ;;  %v340_v30 = vld [vmem:[%s2647_s19 + $0x80] sm:$0xff]  ;;  %v341_v33 = vld [vmem:[%s2647_s19 + $0x88] sm:$0xff] }
  0x2c   : > { %v354_v2 = vld [vmem:[%s2647_s19 + $0xf0] sm:$0xff] }
  0x33   : > { %2138 = vmatmul.msk.f32.gmra.mxu0 %vm357_vm1, %v326_v5  ;;  %2156 = vmatmul.msk.f32.gmra.mxu3 %vm357_vm1, %v344_v6 }
  0x3b   : > { %2139 = vmatmul.msk.f32.gmra.mxu0 %vm357_vm1, %v327_v7  ;;  %2157 = vmatmul.msk.f32.gmra.mxu3 %vm357_vm1, %v345_v8 }
  0x43   : > { %2140 = vmatmul.msk.f32.gmra.mxu0 %vm357_vm1, %v328_v9  ;;  %2158 = vmatmul.msk.f32.gmra.mxu3 %vm357_vm1, %v346_v10 }
  0x4b   : > { %2141 = vmatmul.msk.f32.gmra.mxu0 %vm357_vm1, %v329_v11  ;;  %2159 = vmatmul.msk.f32.gmra.mxu3 %vm357_vm1, %v347_v12 }
  0x53   : > { %2142 = vmatmul.msk.f32.gmra.mxu0 %vm357_vm1, %v330_v13  ;;  %2160 = vmatmul.msk.f32.gmra.mxu3 %vm357_vm1, %v348_v14 }
  0x5b   : > { %2143 = vmatmul.msk.f32.gmra.mxu0 %vm357_vm1, %v331_v15  ;;  %2161 = vmatmul.msk.f32.gmra.mxu3 %vm357_vm1, %v349_v16 }
  0x63   : > { %2144 = vmatmul.msk.f32.gmra.mxu0 %vm357_vm1, %v332_v17  ;;  %2162 = vmatmul.msk.f32.gmra.mxu3 %vm357_vm1, %v350_v18 }
  0x6b   : > { %2145 = vmatmul.msk.f32.gmra.mxu0 %vm357_vm1, %v333_v19  ;;  %2163 = vmatmul.msk.f32.gmra.mxu3 %vm357_vm1, %v351_v20 }
  0x73   : > { %2146 = vmatmul.msk.f32.gmra.mxu0 %vm357_vm1, %v334_v21  ;;  %2164 = vmatmul.msk.f32.gmra.mxu3 %vm357_vm1, %v352_v22 }
  0x7b   : > { %2147 = vmatmul.msk.f32.gmra.mxu0 %vm357_vm1, %v335_v23  ;;  %2165 = vmatmul.msk.f32.gmra.mxu3 %vm357_vm1, %v353_v24 }
  0x83   : > { %2148 = vmatmul.msk.f32.gmra.mxu0 %vm357_vm1, %v336_v25  ;;  %2166 = vmatmul.msk.f32.gmra.mxu3 %vm357_vm1, %v354_v2 }
  0x8b   : > { %2149 = vmatmul.msk.f32.gmra.mxu0 %vm357_vm1, %v337_v26 }
  0x93   : > { %2150 = vmatmul.msk.f32.gmra.mxu0 %vm357_vm1, %v338_v27 }
  0x9b   : > { %2151 = vmatmul.msk.f32.gmra.mxu0 %vm357_vm1, %v339_v28 }
  0xa0   : > { %v475_v29 = vpop.f32.mrf.mxu0 }
  0xa1   : > { %571 = vmin.xlane.f32.xlu0 %v475_v29 }
  0xa3   : > { %2152 = vmatmul.msk.f32.gmra.mxu0 %vm357_vm1, %v340_v30 }
  0xa6   : > { %v2707_v31 = vpop.f32.mrf.mxu3 }
  0xa8   : > { %v2709_v32 = vpop.f32.mrf.mxu0 }
  0xa9   : > { %607 = vmin.xlane.f32.xlu0 %v2707_v31 }
  0xab   : > { %2153 = vmatmul.msk.f32.gmra.mxu0 %vm357_vm1, %v341_v33 }
  0xae   : > { %v2714_v34 = vpop.f32.mrf.mxu3 }
  0xb0   : > { %v2716_v35 = vpop.f32.mrf.mxu0 }
  0xb1   : > { %573 = vmin.xlane.f32.xlu0 %v2709_v32  ;;  %575 = vmin.xlane.f32.xlu1 %v2716_v35 }
  0xb6   : > { %v2720_v36 = vpop.f32.mrf.mxu3 }
  0xb8   : > { %v2722_v37 = vpop.f32.mrf.mxu0 }
  0xb9   : > { %609 = vmin.xlane.f32.xlu0 %v2714_v34  ;;  %611 = vmin.xlane.f32.xlu1 %v2720_v36 }
  0xba   : > { %577 = vmin.xlane.f32.xlu2 %v2722_v37 }
  0xbe   : > { %v2727_v38 = vpop.f32.mrf.mxu3 }
  0xc0   : > { %v2729_v39 = vpop.f32.mrf.mxu0 }
  0xc1   : > { %579 = vmin.xlane.f32.xlu0 %v2729_v39 }
  0xc2   : > { %613 = vmin.xlane.f32.xlu2 %v2727_v38 }
  0xc6   : > { %v2733_v40 = vpop.f32.mrf.mxu3 }
  0xc8   : > { %v2735_v41 = vpop.f32.mrf.mxu0 }
  0xc9   : > { %615 = vmin.xlane.f32.xlu0 %v2733_v40 }
  0xca   : > { %581 = vmin.xlane.f32.xlu2 %v2735_v41 }
  0xce   : > { %v2739_v42 = vpop.f32.mrf.mxu3 }
  0xcf   : > { %617 = vmin.xlane.f32.xlu1 %v2739_v42 }
  0xd0   : > { %v2742_v43 = vpop.f32.mrf.mxu0 }
  0xd2   : > { %583 = vmin.xlane.f32.xlu2 %v2742_v43 }
  0xd6   : > { %v2745_v44 = vpop.f32.mrf.mxu3 }
  0xd7   : > { %619 = vmin.xlane.f32.xlu0 %v2745_v44 }
  0xd8   : > { %v2748_v45 = vpop.f32.mrf.mxu0 }
  0xda   : > { %585 = vmin.xlane.f32.xlu2 %v2748_v45 }
  0xde   : > { %v2751_v46 = vpop.f32.mrf.mxu3 }
  0xe0   : > { %v2753_v47 = vpop.f32.mrf.mxu0 }
  0xe1   : > { %587 = vmin.xlane.f32.xlu0 %v2753_v47 }
  0xe2   : > { %621 = vmin.xlane.f32.xlu2 %v2751_v46 }
  0xe6   : > { %v2757_v48 = vpop.f32.mrf.mxu3 }
  0xe7   : > { %623 = vmin.xlane.f32.xlu1 %v2757_v48 }
  0xe8   : > { %v2760_v49 = vpop.f32.mrf.mxu0 }
  0xee   : > { %v2762_v50 = vpop.f32.mrf.mxu3 }
  0xef   : > { %589 = vmin.xlane.f32.xlu1 %v2760_v49 }
  0xf0   : > { %v2765_v51 = vpop.f32.mrf.mxu0 }
  0xf1   : > { %591 = vmin.xlane.f32.xlu2 %v2765_v51 }
  0xf6   : > { %v2768_v52 = vpop.f32.mrf.mxu3 }
  0xf8   : > { %v2770_v53 = vpop.f32.mrf.mxu0 }
  0xf9   : > { %593 = vmin.xlane.f32.xlu0 %v2770_v53 }
  0xfe   : > { %v2773_v54 = vpop.f32.mrf.mxu3 }
  0xff   : > { %629 = vmin.xlane.f32.xlu1 %v2773_v54 }
 0x100   : > { %v2776_v55 = vpop.f32.mrf.mxu0 }
 0x101   : > { %595 = vmin.xlane.f32.xlu2 %v2776_v55 }
 0x108   : > { %v2779_v56 = vpop.f32.mrf.mxu0 }
 0x109   : > { %597 = vmin.xlane.f32.xlu1 %v2779_v56 }
 0x110   : > { %v2782_v58 = vpop.f32.mrf.mxu0 }
 0x111   : > { %599 = vmin.xlane.f32.xlu1 %v2782_v58 }
 0x114   : > { %v572_v60 = vpop.xlane.xlu0 %571 }
 0x115   : > { %vm637_vm2 = vcmp.eq.f32.partialorder %v475_v29, %v572_v60 }
 0x116   : > { %v2789_v61 = vsel %vm637_vm2, %v2786_v59, 128 }
 0x117   : > { %v702_v62 = vshra.s32 %v2789_v61, 16 }
 0x118   : > { %v2792_v63 = vpop.f32.mrf.mxu0 }
 0x119   : > { %601 = vmin.xlane.f32.xlu2 %v2792_v63  ;;  %v2795_v0 = vcvt.s32.f32 %v702_v62 }
 0x11b   : > { %705 = vmin.xlane.f32.xlu1 %v2795_v0 }
 0x11c   : > { %v608_v1 = vpop.xlane.xlu0 %607 }
 0x11d   : > { %vm655_vm3 = vcmp.eq.f32.partialorder %v2707_v31, %v608_v1 }
 0x11e   : > { %v2804_v4 = vsel %vm655_vm3, %v2786_v59, 128 }
 0x11f   : > { %v954_v7 = vshra.s32 %v2804_v4, 16 }
 0x120   : > { %v2801_v3 = vpop.f32.mrf.mxu0 }
 0x121   : > { %v2812_v9 = vcvt.s32.f32 %v954_v7 }
 0x123   : > { %603 = vmin.xlane.f32.xlu1 %v2801_v3 }
 0x124   : > { %v574_v5 = vpop.xlane.xlu0 %573  ;;  %v576_v6 = vpop.xlane.xlu1 %575 }
 0x125   : > { %vm638_vm4 = vcmp.eq.f32.partialorder %v2709_v32, %v574_v5  ;;  %vm639_vm7 = vcmp.eq.f32.partialorder %v2716_v35, %v576_v6 }
 0x126   : > { %v2815_v10 = vsel %vm638_vm4, %v2786_v59, 128  ;;  %v2836_v21 = vsel %vm639_vm7, %v2786_v59, 128 }
 0x127   : > { %v716_v14 = vshra.s32 %v2815_v10, 16  ;;  %v730_v26 = vshra.s32 %v2836_v21, 16 }
 0x128   : > { %v2809_v8 = vpop.f32.mrf.mxu0 }
 0x129   : > { %605 = vmin.xlane.f32.xlu0 %v2809_v8  ;;  %v2831_v19 = vcvt.s32.f32 %v716_v14  ;;  %v2851_v28 = vcvt.s32.f32 %v730_v26 }
 0x12b   : > { %957 = vmin.xlane.f32.xlu1 %v2812_v9 }
 0x12c   : > { %v610_v11 = vpop.xlane.xlu0 %609  ;;  %v612_v12 = vpop.xlane.xlu1 %611 }
 0x12d   : > { %vm656_vm5 = vcmp.eq.f32.partialorder %v2714_v34, %v610_v11  ;;  %v578_v13 = vpop.xlane.xlu2 %577  ;;  %vm657_vm8 = vcmp.eq.f32.partialorder %v2720_v36, %v612_v12 }
 0x12e   : > { %v2821_v15 = vsel %vm656_vm5, %v2786_v59, 128  ;;  %vm640_vm6 = vcmp.eq.f32.partialorder %v2722_v37, %v578_v13  ;;  %v2839_v22 = vsel %vm657_vm8, %v2786_v59, 128 }
 0x12f   : > { %v2827_v16 = vsel %vm640_vm6, %v2786_v59, 128  ;;  %v968_v17 = vshra.s32 %v2821_v15, 16  ;;  %v982_v27 = vshra.s32 %v2839_v22, 16 }
 0x130   : > { %v744_v18 = vshra.s32 %v2827_v16, 16 }
 0x131   : > { %v2833_v20 = vcvt.s32.f32 %v968_v17  ;;  %v2853_v29 = vcvt.s32.f32 %v982_v27 }
 0x132   : > { %v2841_v23 = vcvt.s32.f32 %v744_v18  ;;  %v355_v18 = vld [vmem:[%s2647_s19 + $0xf8] sm:$0xff] }
 0x133   : > { %719 = vmin.xlane.f32.xlu1 %v2831_v19  ;;  %971 = vmin.xlane.f32.xlu0 %v2833_v20 }
 0x134   : > { %747 = vmin.xlane.f32.xlu2 %v2841_v23  ;;  %v580_v24 = vpop.xlane.xlu0 %579  ;;  %2167 = vmatmul.msk.f32.gmra.mxu3 %vm357_vm1, %v355_v18 }
 0x135   : > { %v2846_v25 = vpop.xlane.xlu2 %613  ;;  %vm641_vm9 = vcmp.eq.f32.partialorder %v2729_v39, %v580_v24 }
 0x136   : > { %v2856_v30 = vsel %vm641_vm9, %v2786_v59, 128  ;;  %vm658_vm1 = vcmp.eq.f32.partialorder %v2727_v38, %v2846_v25 }
 0x137   : > { %v758_v32 = vshra.s32 %v2856_v30, 16 }
 0x139   : > { %v2866_v35 = vcvt.s32.f32 %v758_v32 }
 0x13b   : > { %733 = vmin.xlane.f32.xlu1 %v2851_v28  ;;  %985 = vmin.xlane.f32.xlu0 %v2853_v29 }
 0x13c   : > { %v2871_v37 = vpop.xlane.xlu0 %615 }
 0x13d   : > { %v582_v31 = vpop.xlane.xlu2 %581  ;;  %vm659_vm8 = vcmp.eq.f32.partialorder %v2733_v40, %v2871_v37 }
 0x13e   : > { %vm642_vm10 = vcmp.eq.f32.partialorder %v2735_v41, %v582_v31 }
 0x13f   : > { %v2863_v33 = vsel %vm642_vm10, %v2786_v59, 128 }
 0x140   : > { %v772_v34 = vshra.s32 %v2863_v33, 16 }
 0x142   : > { %v2868_v36 = vcvt.s32.f32 %v772_v34 }
 0x143   : > { %761 = vmin.xlane.f32.xlu0 %v2866_v35 }
 0x144   : > { %775 = vmin.xlane.f32.xlu1 %v2868_v36 }
 0x145   : > { %v584_v39 = vpop.xlane.xlu2 %583 }
 0x146   : > { %vm643_vm11 = vcmp.eq.f32.partialorder %v2742_v43, %v584_v39 }
 0x147   : > { %v2876_v41 = vsel %vm643_vm11, %v2786_v59, 128 }
 0x148   : > { %v786_v60 = vshra.s32 %v2876_v41, 16 }
 0x14a   : > { %v2879_v62 = vcvt.s32.f32 %v786_v60  ;;  %v2881_v1 = vpop.xlane.xlu0 %619 }
 0x14c   : > { %789 = vmin.xlane.f32.xlu0 %v2879_v62 }
 0x14d   : > { %v586_v2 = vpop.xlane.xlu2 %585 }
 0x14e   : > { %vm644_vm12 = vcmp.eq.f32.partialorder %v2748_v45, %v586_v2  ;;  %v2899_v45 = vpop.xlane.xlu1 %617 }
 0x14f   : > { %v2886_v5 = vsel %vm644_vm12, %v2786_v59, 128  ;;  %vm660_vm12 = vcmp.eq.f32.partialorder %v2739_v42, %v2899_v45  ;;  %v771_v42 = vand.u32 65535, %v2863_v33 }
 0x150   : > { %v800_v43 = vshra.s32 %v2886_v5, 16 }
 0x152   : > { %v2889_v6 = vcvt.s32.f32 %v800_v43 }
 0x154   : > { %803 = vmin.xlane.f32.xlu2 %v2889_v6  ;;  %v588_v7 = vpop.xlane.xlu0 %587 }
 0x155   : > { %vm645_vm13 = vcmp.eq.f32.partialorder %v2753_v47, %v588_v7  ;;  %v2906_v24 = vpop.xlane.xlu2 %621 }
 0x156   : > { %v2894_v11 = vsel %vm645_vm13, %v2786_v59, 128 }
 0x157   : > { %v814_v12 = vshra.s32 %v2894_v11, 16 }
 0x159   : > { %v2897_v13 = vcvt.s32.f32 %v814_v12 }
 0x15a   : > { %v2902_v14 = vpop.xlane.xlu1 %623 }
 0x15c   : > { %817 = vmin.xlane.f32.xlu2 %v2897_v13 }
 0x162   : > { %v590_v17 = vpop.xlane.xlu1 %589 }
 0x163   : > { %vm646_vm15 = vcmp.eq.f32.partialorder %v2760_v49, %v590_v17 }
 0x164   : > { %v592_v26 = vpop.xlane.xlu2 %591  ;;  %v2923_v2 = vsel %vm646_vm15, %v2786_v59, 128 }
 0x165   : > { %4238 = vst [vmem:[#allocation8_spill] sm:$0xff] %v2923_v2  ;;  %v828_v7 = vshra.s32 %v2923_v2, 16  ;;  %vm647_vm4 = vcmp.eq.f32.partialorder %v2765_v51, %v592_v26 }
 0x167   : > { %v2936_v17 = vcvt.s32.f32 %v828_v7 }
 0x169   : > { %4239 = vst [vmem:[#allocation9_spill] sm:$0xff] %v2936_v17 }
 0x172   : > { %v2908_v47 = vpop.xlane.xlu1 %629 }
 0x174   : > { %v2912_v31 = vpop.xlane.xlu2 %595 }
 0x17c   : > { %v2910_v27 = vpop.xlane.xlu1 %597 }
 0x184   : > { %v600_v32 = vpop.xlane.xlu1 %599 }
 0x185   : > { %vm651_vm14 = vcmp.eq.f32.partialorder %v2782_v58, %v600_v32  ;;  %v2941_v32 = vsel %vm658_vm1, %v2786_v59, 128 }
 0x186   : > { %v2916_v34 = vsel %vm651_vm14, %v2786_v59, 128  ;;  %vm649_vm14 = vcmp.eq.f32.partialorder %v2776_v55, %v2912_v31 }
 0x187   : > { %v898_v39 = vshra.s32 %v2916_v34, 16 }
 0x189   : > { %v2920_v60 = vcvt.s32.f32 %v898_v39  ;;  %v2946_v39 = vpop.xlane.xlu0 %593 }
 0x18a   : > { %vm648_vm15 = vcmp.eq.f32.partialorder %v2770_v53, %v2946_v39 }
 0x18b   : > { %901 = vmin.xlane.f32.xlu2 %v2920_v60  ;;  %v3049_v55 = vsel %vm648_vm15, %v2786_v59, 128 }
 0x18c   : > { %v602_v43 = vpop.xlane.xlu2 %601  ;;  %v856_v31 = vshra.s32 %v3049_v55, 16 }
 0x18d   : > { %vm652_vm0 = vcmp.eq.f32.partialorder %v2792_v63, %v602_v43  ;;  %v701_v63 = vand.u32 65535, %v2789_v61  ;;  %v996_v43 = vshra.s32 %v2941_v32, 16 }
 0x18e   : > { %v2929_v58 = vsel %vm652_vm0, %v2786_v59, 128  ;;  %v2931_v12 = vpop.xlane.xlu1 %705 }
 0x18f   : > { %v912_v49 = vshra.s32 %v2929_v58, 16  ;;  %vm707_vm2 = vcmp.eq.f32.partialorder %v2795_v0, %v2931_v12  ;;  %v703_v25 = vcvt.s32.f32 %v701_v63  ;;  %v2951_v7 = vcvt.s32.f32 %v996_v43 }
 0x190   : > { %v715_v63 = vand.u32 65535, %v2815_v10  ;;  %v967_v43 = vand.u32 65535, %v2821_v15 }
 0x191   : > { %v2938_v18 = vcvt.s32.f32 %v912_v49  ;;  %v708_v49 = vsel %vm707_vm2, %v703_v25, inf  ;;  %v2967_v25 = vsel %vm647_vm4, %v2786_v59, 128 }
 0x192   : > { %v717_v26 = vcvt.s32.f32 %v715_v63  ;;  %v981_v63 = vand.u32 65535, %v2839_v22 }
 0x193   : > { %831 = vmin.xlane.f32.xlu2 %v2936_v17  ;;  %915 = vmin.xlane.f32.xlu0 %v2938_v18 }
 0x196   : > { %v604_v38 = vpop.xlane.xlu1 %603 }
 0x197   : > { %vm653_vm5 = vcmp.eq.f32.partialorder %v2801_v3, %v604_v38  ;;  %v729_v38 = vand.u32 65535, %v2836_v21 }
 0x198   : > { %v2981_v10 = vsel %vm653_vm5, %v2786_v59, 128  ;;  %vm663_vm5 = vcmp.eq.f32.partialorder %v2757_v48, %v2902_v14  ;;  %v1349_v48 = vld [vmem:[%s4243_s2 + $0x38] sm:$0xff] }
 0x19b   : > { %709 = vmin.xlane.f32.xlu2 %v708_v49  ;;  %999 = vmin.xlane.f32.xlu0 %v2951_v7 }
 0x19c   : > { %v606_v57 = vpop.xlane.xlu0 %605 }
 0x19d   : > { %vm654_vm3 = vcmp.eq.f32.partialorder %v2809_v8, %v606_v57  ;;  %v842_v57 = vshra.s32 %v2967_v25, 16 }
 0x19e   : > { %v2956_v61 = vsel %vm654_vm3, %v2786_v59, 128  ;;  %v2958_v17 = vpop.xlane.xlu1 %957  ;;  %vm662_vm3 = vcmp.eq.f32.partialorder %v2751_v46, %v2906_v24  ;;  %v1352_v24 = vld [vmem:[%s4243_s2 + $0x50] sm:$0xff] }
 0x19f   : > { %v940_v2 = vshra.s32 %v2956_v61, 16  ;;  %v2985_v3 = vcvt.s32.f32 %v842_v57  ;;  %v731_v57 = vcvt.s32.f32 %v729_v38  ;;  %vm959_vm1 = vcmp.eq.f32.partialorder %v2812_v9, %v2958_v17  ;;  %v1355_v9 = vld [vmem:[%s4243_s2 + $0x68] sm:$0xff] }
 0x1a1   : > { %v2962_v0 = vcvt.s32.f32 %v940_v2  ;;  %v969_v2 = vcvt.s32.f32 %v967_v43  ;;  %v743_v43 = vand.u32 65535, %v2827_v16  ;;  %v3009_v16 = vsel %vm659_vm8, %v2786_v59, 128 }
 0x1a3   : > { %943 = vmin.xlane.f32.xlu2 %v2962_v0  ;;  %v745_v22 = vcvt.s32.f32 %v743_v43 }
 0x1a6   : > { %v2972_v8 = vpop.xlane.xlu1 %719  ;;  %v2974_v51 = vpop.xlane.xlu0 %971 }
 0x1a7   : > { %4240 = vst [vmem:[#allocation10_spill] sm:$0xff] %v2974_v51  ;;  %vm721_vm6 = vcmp.eq.f32.partialorder %v2831_v19, %v2972_v8  ;;  %vm973_vm7 = vcmp.eq.f32.partialorder %v2833_v20, %v2974_v51  ;;  %v926_v19 = vshra.s32 %v2981_v10, 16  ;;  %v2992_v20 = vpop.xlane.xlu2 %747 }
 0x1a8   : > { %v722_v15 = vsel %vm721_vm6, %v717_v26, inf  ;;  %v2983_v49 = vsel %vm973_vm7, %v969_v2, inf  ;;  %vm749_vm10 = vcmp.eq.f32.partialorder %v2841_v23, %v2992_v20  ;;  %vm666_vm6 = vcmp.eq.f32.partialorder %v2773_v54, %v2908_v47  ;;  %v1345_v47 = vld [vmem:[%s4243_s2 + $0x18] sm:$0xff] }
 0x1a9   : > { %723 = vmin.xlane.f32.xlu1 %v722_v15  ;;  %v983_v15 = vcvt.s32.f32 %v981_v63  ;;  %v3000_v21 = vcvt.s32.f32 %v926_v19  ;;  %v750_v38 = vsel %vm749_vm10, %v745_v22, inf  ;;  %v757_v63 = vand.u32 65535, %v2856_v30 }
 0x1aa   : > { %v3025_v19 = vsel %vm660_vm12, %v2786_v59, 128  ;;  %v773_v22 = vcvt.s32.f32 %v771_v42  ;;  %v3130_v54 = vsel %vm666_vm6, %v2786_v59, 128 }
 0x1ab   : > { %845 = vmin.xlane.f32.xlu2 %v2985_v3  ;;  %v759_v43 = vcvt.s32.f32 %v757_v63  ;;  %v1024_v30 = vshra.s32 %v3025_v19, 16  ;;  %v953_v63 = vand.u32 65535, %v2804_v4  ;;  %v1356_v4 = vld [vmem:[%s4243_s2 + $0x70] sm:$0xff]  ;;  %4244 = vst [vmem:[#allocation13_spill] sm:$0xff] %v3130_v54 }
 0x1ae   : > { %v2996_v26 = vpop.xlane.xlu1 %733  ;;  %v2998_v2 = vpop.xlane.xlu0 %985 }
 0x1af   : > { %4241 = vst [vmem:[#allocation11_spill] sm:$0xff] %v2998_v2  ;;  %vm735_vm9 = vcmp.eq.f32.partialorder %v2851_v28, %v2996_v26  ;;  %vm987_vm11 = vcmp.eq.f32.partialorder %v2853_v29, %v2998_v2  ;;  %v1010_v28 = vshra.s32 %v3009_v16, 16 }
 0x1b0   : > { %v736_v40 = vsel %vm735_vm9, %v731_v57, inf  ;;  %v3011_v37 = vsel %vm987_vm11, %v983_v15, inf  ;;  %v3039_v15 = vcvt.s32.f32 %v1024_v30  ;;  %v955_v30 = vcvt.s32.f32 %v953_v63  ;;  %v1351_v63 = vld [vmem:[%s4243_s2 + $0x48] sm:$0xff] }
 0x1b1   : > { %929 = vmin.xlane.f32.xlu1 %v3000_v21  ;;  %737 = vmin.xlane.f32.xlu0 %v736_v40  ;;  %v3020_v29 = vcvt.s32.f32 %v1010_v28  ;;  %v3044_v40 = vsel %vm649_vm14, %v2786_v59, 128  ;;  %v813_v28 = vand.u32 65535, %v2894_v11  ;;  %v1357_v11 = vld [vmem:[%s4243_s2 + $0x78] sm:$0xff]  ;;  %vm1309_vm9 = vcmask 7168  }
 0x1b2   : > { %v870_v53 = vshra.s32 %v3044_v40, 16  ;;  %1358 = vmatpush.msra.mxu1 %v1357_v11  ;;  %2335 = vmatpush.msra.mxu2 %v1357_v11  ;;  %vm661_vm11 = vcmp.eq.f32.partialorder %v2745_v44, %v2881_v1  ;;  %v726_v44 = vcvt.f32.s32 %v2972_v8 }
 0x1b3   : > { %751 = vmin.xlane.f32.xlu2 %v750_v38  ;;  %v3058_v38 = vcvt.s32.f32 %v856_v31  ;;  %2336 = vmatpush.msrb.mxu3 %v1357_v11  ;;  %v3092_v31 = vsel %vm662_vm3, %v2786_v59, 128 }
 0x1b4   : > { %1359 = vmatpush.msra.mxu1 %v1356_v4  ;;  %2337 = vmatpush.msra.mxu2 %v1356_v4 }
 0x1b5   : > { %2338 = vmatpush.msrb.mxu3 %v1356_v4  ;;  %v1347_v4 = vld [vmem:[%s4243_s2 + $0x28] sm:$0xff] }
 0x1b6   : > { %v3018_v23 = vpop.xlane.xlu0 %761  ;;  %1360 = vmatpush.msra.mxu1 %v1355_v9  ;;  %2339 = vmatpush.msra.mxu2 %v1355_v9 }
 0x1b7   : > { %vm763_vm13 = vcmp.eq.f32.partialorder %v2866_v35, %v3018_v23  ;;  %v3031_v45 = vpop.xlane.xlu1 %775  ;;  %v3035_v35 = vpop.f32.mrf.mxu3  ;;  %2340 = vmatpush.msrb.mxu3 %v1355_v9  ;;  %v1108_v9 = vshra.s32 %v3130_v54, 16 }
 0x1b8   : > { %v764_v57 = vsel %vm763_vm13, %v759_v43, inf  ;;  %vm777_vm0 = vcmp.eq.f32.partialorder %v2868_v36, %v3031_v45  ;;  %v3055_v36 = vcvt.s32.f32 %v870_v53  ;;  %v1353_v53 = vld [vmem:[%s4243_s2 + $0x58] sm:$0xff]  ;;  %vm650_vm13 = vcmp.eq.f32.partialorder %v2779_v56, %v2910_v27 }
 0x1b9   : > { %625 = vmin.xlane.f32.xlu1 %v2762_v50  ;;  %1013 = vmin.xlane.f32.xlu0 %v3020_v29  ;;  %v778_v33 = vsel %vm777_vm0, %v773_v22, inf  ;;  %v960_v22 = vsel %vm959_vm1, %v955_v30, inf  ;;  %v3109_v30 = vsel %vm663_vm5, %v2786_v59, 128  ;;  %v925_v56 = vand.u32 65535, %v2981_v10 }
 0x1ba   : > { %v1066_v14 = vshra.s32 %v3109_v30, 16 }
 0x1bb   : > { %765 = vmin.xlane.f32.xlu2 %v764_v57  ;;  %v815_v57 = vcvt.s32.f32 %v813_v28 }
 0x1bc   : > { %v3121_v11 = vcvt.s32.f32 %v1066_v14  ;;  %v911_v14 = vand.u32 65535, %v2929_v58 }
 0x1c1   : > { %631 = vmin.xlane.f32.xlu1 %v3035_v35  ;;  %1027 = vmin.xlane.f32.xlu0 %v3039_v15 }
 0x1c3   : > { %779 = vmin.xlane.f32.xlu2 %v778_v33  ;;  %v799_v33 = vand.u32 65535, %v2886_v5 }
 0x1c5   : > { %v801_v5 = vcvt.s32.f32 %v799_v33  ;;  %v1346_v33 = vld [vmem:[%s4243_s2 + $0x20] sm:$0xff] }
 0x1c7   : > { %v3053_v39 = vpop.xlane.xlu2 %803 }
 0x1c8   : > { %vm805_vm4 = vcmp.eq.f32.partialorder %v2889_v6, %v3053_v39  ;;  %v1052_v6 = vshra.s32 %v3092_v31, 16 }
 0x1c9   : > { %873 = vmin.xlane.f32.xlu0 %v3055_v36  ;;  %v806_v46 = vsel %vm805_vm4, %v801_v5, inf  ;;  %v3140_v5 = vcvt.s32.f32 %v1108_v9  ;;  %v3165_v9 = vpop.f32.mrf.mxu3 }
 0x1ca   : > { %v3100_v28 = vcvt.s32.f32 %v1052_v6  ;;  %v897_v6 = vand.u32 65535, %v2916_v34 }
 0x1cb   : > { %859 = vmin.xlane.f32.xlu2 %v3058_v38  ;;  %4245 = vst [vmem:[#allocation14_spill] sm:$0xff] %v3140_v5 }
 0x1cf   : > { %v3063_v43 = vpop.xlane.xlu2 %817 }
 0x1d0   : > { %4242 = vst [vmem:[#allocation12_spill] sm:$0xff] %v3063_v43  ;;  %vm819_vm2 = vcmp.eq.f32.partialorder %v2897_v13, %v3063_v43  ;;  %v1354_v13 = vld [vmem:[%s4243_s2 + $0x60] sm:$0xff] }
 0x1d1   : > { %v3069_v42 = vsel %vm819_vm2, %v815_v57, inf  ;;  %1361 = vmatpush.msra.mxu1 %v1354_v13  ;;  %2341 = vmatpush.msra.mxu2 %v1354_v13  ;;  %v1350_v57 = vld [vmem:[%s4243_s2 + $0x40] sm:$0xff] }
 0x1d2   : > { %2342 = vmatpush.msrb.mxu3 %v1354_v13  ;;  %v1344_v13 = vld [vmem:[%s4243_s2 + $0x10] sm:$0xff] }
 0x1d3   : > { %961 = vmin.xlane.f32.xlu2 %v960_v22  ;;  %1362 = vmatpush.msra.mxu1 %v1353_v53  ;;  %v1348_v22 = vld [vmem:[%s4243_s2 + $0x30] sm:$0xff] }
 0x1d4   : > { %2343 = vmatpush.msra.mxu2 %v1353_v53  ;;  %2344 = vmatpush.msrb.mxu3 %v1353_v53  ;;  %v1343_v53 = vld [vmem:[%s4243_s2 + $0x8] sm:$0xff] }
 0x1d5   : > { %1363 = vmatpush.msra.mxu1 %v1352_v24 }
 0x1d6   : > { %2345 = vmatpush.msra.mxu2 %v1352_v24  ;;  %2346 = vmatpush.msrb.mxu3 %v1352_v24  ;;  %v3150_v24 = vpop.xlane.xlu0 %789 }
 0x1d7   : > { %1364 = vmatpush.msra.mxu1 %v1351_v63  ;;  %vm791_vm12 = vcmp.eq.f32.partialorder %v2879_v62, %v3150_v24 }
 0x1d8   : > { %2347 = vmatpush.msra.mxu2 %v1351_v63  ;;  %2348 = vmatpush.msrb.mxu3 %v1351_v63 }
 0x1d9   : > { %1365 = vmatpush.msra.mxu1 %v1350_v57 }
 0x1da   : > { %2349 = vmatpush.msra.mxu2 %v1350_v57  ;;  %2350 = vmatpush.msrb.mxu3 %v1350_v57  ;;  %v899_v57 = vcvt.s32.f32 %v897_v6  ;;  %v4223_v6 = vmov 1.0  }
 0x1db   : > { %807 = vmin.xlane.f32.xlu2 %v806_v46  ;;  %1366 = vmatpush.msra.mxu1 %v1349_v48  ;;  %v1342_v46 = vld [vmem:[%s4243_s2] sm:$0xff] }
 0x1dc   : > { %2351 = vmatpush.msra.mxu2 %v1349_v48  ;;  %2352 = vmatpush.msrb.mxu3 %v1349_v48 }
 0x1dd   : > { %1367 = vmatpush.msra.mxu1 %v1348_v22 }
 0x1de   : > { %2353 = vmatpush.msra.mxu2 %v1348_v22  ;;  %2354 = vmatpush.msrb.mxu3 %v1348_v22 }
 0x1df   : > { %1368 = vmatpush.msra.mxu1 %v1347_v4 }
 0x1e0   : > { %2355 = vmatpush.msra.mxu2 %v1347_v4  ;;  %2356 = vmatpush.msrb.mxu3 %v1347_v4 }
 0x1e1   : > { %1369 = vmatpush.msra.mxu1 %v1346_v33 }
 0x1e2   : > { %2357 = vmatpush.msra.mxu2 %v1346_v33  ;;  %2358 = vmatpush.msrb.mxu3 %v1346_v33  ;;  %v913_v33 = vcvt.s32.f32 %v911_v14 }
 0x1e3   : > { %1055 = vmin.xlane.f32.xlu2 %v3100_v28  ;;  %1370 = vmatpush.msra.mxu1 %v1345_v47 }
 0x1e4   : > { %2359 = vmatpush.msra.mxu2 %v1345_v47  ;;  %2360 = vmatpush.msrb.mxu3 %v1345_v47 }
 0x1e5   : > { %1371 = vmatpush.msra.mxu1 %v1344_v13 }
 0x1e6   : > { %2361 = vmatpush.msra.mxu2 %v1344_v13  ;;  %2362 = vmatpush.msrb.mxu3 %v1344_v13 }
 0x1e7   : > { %1372 = vmatpush.msra.mxu1 %v1343_v53 }
 0x1e8   : > { %2363 = vmatpush.msra.mxu2 %v1343_v53  ;;  %2364 = vmatpush.msrb.mxu3 %v1343_v53  ;;  %v785_v53 = vand.u32 65535, %v2876_v41 }
 0x1e9   : > { %1373 = vmatpush.msra.mxu1 %v1342_v46 }
 0x1ea   : > { %2365 = vmatpush.msra.mxu2 %v1342_v46  ;;  %2366 = vmatpush.msrb.mxu3 %v1342_v46  ;;  %v787_v14 = vcvt.s32.f32 %v785_v53 }
 0x1eb   : > { %1069 = vmin.xlane.f32.xlu2 %v3121_v11 }
 0x1ec   : > { %v792_v1 = vsel %vm791_vm12, %v787_v14, inf  ;;  %v3215_v14 = vsel %vm650_vm13, %v2786_v59, 128 }
 0x1f3   : > { %1111 = vmin.xlane.f32.xlu2 %v3140_v5 }
 0x1fe   : > { %v3152_v63 = vpop.xlane.xlu2 %901 }
 0x1ff   : > { %vm903_vm7 = vcmp.eq.f32.partialorder %v2920_v60, %v3152_v63  ;;  %v712_v60 = vcvt.f32.s32 %v2931_v12  ;;  %v4246_v12 = vlaneseq }
 0x200   : > { %v904_v48 = vsel %vm903_vm7, %v899_v57, inf  ;;  %v3190_v57 = vstv %s2232_s18  ;;  %s1960_s18 = scalar_lea.hbm %s4213_s6, %s2610_s28 }
 0x201   : > { %905 = vmin.xlane.f32.xlu1 %v904_v48  ;;  %v713_v13 = vshll.u32 %v712_v60, 16  ;;  %v3180_v46 = vshrl.u32 %v4246_v12, 7 }
 0x203   : > { %v1507_v41 = vadd.s32 8, %v3180_v46  ;;  %v1508_v53 = vadd.s32 16, %v3180_v46 }
 0x205   : > { %v1540_v62 = vadd.s32 %v3190_v57, %v1507_v41  ;;  %v1541_v10 = vadd.s32 %v3190_v57, %v1508_v53  ;;  %v927_v53 = vcvt.s32.f32 %v925_v56  ;;  %v1510_v56 = vadd.s32 32, %v3180_v46 }
 0x206   : > { %v3157_v22 = vpop.xlane.xlu2 %831  ;;  %v3159_v4 = vpop.xlane.xlu0 %915 }
 0x207   : > { %vm917_vm8 = vcmp.eq.f32.partialorder %v2938_v18, %v3159_v4  ;;  %vm1572_vm15 = vcmp.lt.s32.totalorder %v1540_v62, 512  ;;  %vm1573_vm2 = vcmp.lt.s32.totalorder %v1541_v10, 512 }
 0x208   : > { %v918_v34 = vsel %vm917_vm8, %v913_v33, inf  ;;  %v3195_v33 = vsel %vm661_vm11, %v2786_v59, 128 }
 0x209   : > { %627 = vmin.xlane.f32.xlu1 %v2768_v52  ;;  %919 = vmin.xlane.f32.xlu0 %v918_v34  ;;  %v1539_v34 = vadd.s32 %v3190_v57, %v3180_v46  ;;  %v1038_v60 = vshra.s32 %v3195_v33, 16 }
 0x20b   : > { %vm1571_vm14 = vcmp.lt.s32.totalorder %v1539_v34, 512  ;;  %v3212_v41 = vcvt.s32.f32 %v1038_v60  ;;  %v4225_v34 = vmov 0.0  }
 0x20c   : > { %v3228_v60 = vsel %vm1572_vm15, 1.0, %v4225_v34 }
 0x20d   : > { %4247 = vst [vmem:[#allocation15_spill] sm:$0xff] %v3228_v60 }
 0x20e   : > { %v710_v47 = vpop.xlane.xlu2 %709 }
 0x20f   : > { %v711_v58 = vcvt.f32.s32 %v710_v47  ;;  %v727_v47 = vshll.u32 %v726_v44, 16  ;;  %v1509_v44 = vadd.s32 24, %v3180_v46 }
 0x211   : > { %v714_v18 = vadd.s32 %v713_v13, %v711_v58  ;;  %633 = vmin.xlane.f32.xlu1 %v3165_v9  ;;  %v3204_v13 = vpop.xlane.xlu0 %999  ;;  %v1542_v5 = vadd.s32 %v3190_v57, %v1509_v44 }
 0x212   : > { %vm1001_vm11 = vcmp.eq.f32.partialorder %v2951_v7, %v3204_v13  ;;  %v855_v7 = vand.u32 65535, %v3049_v55 }
 0x213   : > { %1310 = vst.msk [vmem:[%s3171_s17] sm:$0xff] %vm1309_vm9, %v714_v18  ;;  %vm1149_vm10 = vcmp.eq.s32.totalorder %v2786_v59, %v714_v18  ;;  %v884_v18 = vshra.s32 %v3215_v14, 16  ;;  %vm1574_vm3 = vcmp.lt.s32.totalorder %v1542_v5, 512 }
 0x214   : > { %2200 = vmatmul.msk.f32.vlgmr.msra.gmra.mxu1 %vm1149_vm10, %v4223_v6  ;;  %v2168_v62 = vsel %vm1149_vm10, 1.0, %v4225_v34 }
 0x215   : > { %v3249_v44 = vcvt.s32.f32 %v884_v18 }
 0x216   : > { %v3192_v48 = vpop.xlane.xlu2 %943 }
 0x217   : > { %vm945_vm5 = vcmp.eq.f32.partialorder %v2962_v0, %v3192_v48 }
 0x219   : > { %793 = vmin.xlane.f32.xlu1 %v792_v1  ;;  %v740_v1 = vcvt.f32.s32 %v2996_v26  ;;  %v754_v26 = vcvt.f32.s32 %v2992_v20 }
 0x21b   : > { %v741_v2 = vshll.u32 %v740_v1, 16 }
 0x21c   : > { %v724_v58 = vpop.xlane.xlu1 %723 }
 0x21d   : > { %v725_v8 = vcvt.f32.s32 %v724_v58  ;;  %v3225_v58 = vsel %vm1571_vm14, 1.0, %v4225_v34 }
 0x21e   : > { %v3210_v12 = vpop.xlane.xlu2 %845 }
 0x21f   : > { %v728_v27 = vadd.s32 %v727_v47, %v725_v8  ;;  %v1667_v8 = vmul.f32 %v3225_v58, %v2168_v62  ;;  %vm847_vm14 = vcmp.eq.f32.partialorder %v2985_v3, %v3210_v12 }
 0x221   : > { %1311 = vst.msk [vmem:[%s3171_s17 + $0x8] sm:$0xff] %vm1309_vm9, %v728_v27  ;;  %1041 = vmin.xlane.f32.xlu1 %v3212_v41  ;;  %vm1150_vm0 = vcmp.eq.s32.totalorder %v2786_v59, %v728_v27 }
 0x222   : > { %v2169_v47 = vsel %vm1150_vm0, 1.0, %v4225_v34  ;;  %2201 = vmatmul.msk.f32.gmra.mxu1 %vm1150_vm0, %v4223_v6 }
 0x223   : > { %v2272_v43 = vpack.c.bf16 %v2169_v47, %v2168_v62  ;;  %v1668_v51 = vmul.f32 %v3228_v60, %v2169_v47  ;;  %v755_v62 = vshll.u32 %v754_v26, 16 }
 0x224   : > { %v3242_v54 = vpop.xlane.xlu1 %929  ;;  %v738_v27 = vpop.xlane.xlu0 %737 }
 0x225   : > { %2273 = vst [vmem:[%s3244_s22] sm:$0xff] %v2272_v43   ;;  %v1699_v20 = vadd.f32 %v1668_v51, %v1667_v8  ;;  %v739_v6 = vcvt.f32.s32 %v738_v27  ;;  %vm931_vm1 = vcmp.eq.f32.partialorder %v3000_v21, %v3242_v54  ;;  %v1009_v51 = vand.u32 65535, %v3009_v16 }
 0x226   : > { %v752_v47 = vpop.xlane.xlu2 %751  ;;  %v932_v34 = vsel %vm931_vm1, %v927_v53, inf  ;;  %v939_v43 = vand.u32 65535, %v2956_v61  ;;  %v4248_v8 = vmov 0.0  }
 0x227   : > { %v742_v1 = vadd.s32 %v741_v2, %v739_v6  ;;  %v753_v60 = vcvt.f32.s32 %v752_v47  ;;  %933 = vmin.xlane.f32.xlu0 %v932_v34  ;;  %v3255_v27 = vsel %vm1573_vm2, 1.0, %v4248_v8  ;;  %v768_v2 = vcvt.f32.s32 %v3018_v23 }
 0x228   : > { %4249 = vst [vmem:[#allocation16_spill] sm:$0xff] %v3255_v27  ;;  %v4250_v6 = vmov 1.0   ;;  %v3265_v16 = vsel %vm1574_vm3, 1.0, %v4248_v8  ;;  %v1543_v34 = vadd.s32 %v3190_v57, %v1510_v56  ;;  %v941_v23 = vcvt.s32.f32 %v939_v43 }
 0x229   : > { %1312 = vst.msk [vmem:[%s3171_s17 + $0x10] sm:$0xff] %vm1309_vm9, %v742_v1  ;;  %v756_v21 = vadd.s32 %v755_v62, %v753_v60  ;;  %887 = vmin.xlane.f32.xlu1 %v3249_v44  ;;  %vm1151_vm4 = vcmp.eq.s32.totalorder %v2786_v59, %v742_v1  ;;  %v1011_v10 = vcvt.s32.f32 %v1009_v51  ;;  %v769_v56 = vshll.u32 %v768_v2, 16 }
 0x22a   : > { %v2170_v5 = vsel %vm1151_vm4, 1.0, %v4248_v8  ;;  %2202 = vmatmul.msk.f32.gmra.mxu1 %vm1151_vm4, %v4250_v6  ;;  %v946_v62 = vsel %vm945_vm5, %v941_v23, inf  ;;  %vm1575_vm8 = vcmp.lt.s32.totalorder %v1543_v34, 512  ;;  %v1511_v51 = vadd.s32 40, %v3180_v46 }
 0x22b   : > { %1313 = vst.msk [vmem:[%s3171_s17 + $0x18] sm:$0xff] %vm1309_vm9, %v756_v21  ;;  %v1669_v61 = vmul.f32 %v3255_v27, %v2170_v5  ;;  %vm1152_vm6 = vcmp.eq.s32.totalorder %v2786_v59, %v756_v21  ;;  %v782_v2 = vcvt.f32.s32 %v3031_v45 }
 0x22c   : > { %v3274_v60 = vpop.xlane.xlu0 %1013  ;;  %v2171_v26 = vsel %vm1152_vm6, 1.0, %v4248_v8 }
 0x22d   : > { %v1700_v18 = vadd.f32 %v1699_v20, %v1669_v61  ;;  %vm1015_vm7 = vcmp.eq.f32.partialorder %v3020_v29, %v3274_v60  ;;  %v2275_v47 = vpack.c.bf16 %v2171_v26, %v2170_v5  ;;  %v1670_v1 = vmul.f32 %v3265_v16, %v2171_v26 }
 0x22e   : > { %v766_v53 = vpop.xlane.xlu2 %765  ;;  %v1016_v0 = vsel %vm1015_vm7, %v1011_v10, inf  ;;  %v995_v29 = vand.u32 65535, %v2941_v32  ;;  %v3290_v5 = vsel %vm1575_vm8, 1.0, %v4248_v8  ;;  %v1544_v61 = vadd.s32 %v3190_v57, %v1511_v51 }
 0x22f   : > { %v767_v27 = vcvt.f32.s32 %v766_v53  ;;  %947 = vmin.xlane.f32.xlu0 %v946_v62  ;;  %1017 = vmin.xlane.f32.xlu2 %v1016_v0  ;;  %2319 = vst [vmem:[%s3244_s22 + $0x8] sm:$0xff] %v2275_v47   ;;  %v1701_v43 = vadd.f32 %v1700_v18, %v1670_v1  ;;  %v783_v34 = vshll.u32 %v782_v2, 16  ;;  %v841_v53 = vand.u32 65535, %v2967_v25  ;;  %v626_v0 = vpop.xlane.xlu1 %625 }
 0x230   : > { %v997_v21 = vcvt.s32.f32 %v995_v29  ;;  %vm1576_vm12 = vcmp.lt.s32.totalorder %v1544_v61, 512  ;;  %v869_v2 = vand.u32 65535, %v3044_v40  ;;  %vm664_vm0 = vcmp.eq.f32.partialorder %v2762_v50, %v626_v0 }
 0x231   : > { %v770_v20 = vadd.s32 %v769_v56, %v767_v27  ;;  %989 = vmin.xlane.f32.xlu1 %v3011_v37  ;;  %v3312_v62 = vsel %vm1576_vm12, 1.0, %v4248_v8  ;;  %v843_v1 = vcvt.s32.f32 %v841_v53  ;;  %v857_v56 = vcvt.s32.f32 %v855_v7 }
 0x232   : > { %2203 = vmatmul.msk.f32.gmra.mxu1 %vm1152_vm6, %v4250_v6  ;;  %v1002_v26 = vsel %vm1001_vm11, %v997_v21, inf  ;;  %v3345_v40 = vsel %vm664_vm0, %v2786_v59, 128  ;;  %v871_v21 = vcvt.s32.f32 %v869_v2  ;;  %vm1471_vm12 = vcmask 31744  }
 0x233   : > { %1314 = vst.msk [vmem:[%s3171_s17 + $0x20] sm:$0xff] %vm1309_vm9, %v770_v20  ;;  %vm1153_vm10 = vcmp.eq.s32.totalorder %v2786_v59, %v770_v20  ;;  %v848_v29 = vsel %vm847_vm14, %v843_v1, inf }
 0x234   : > { %v2172_v37 = vsel %vm1153_vm10, 1.0, %v4248_v8  ;;  %v3304_v10 = vpop.xlane.xlu0 %1027 }
 0x235   : > { %v1671_v32 = vmul.f32 %v3290_v5, %v2172_v37  ;;  %vm1029_vm5 = vcmp.eq.f32.partialorder %v3039_v15, %v3304_v10 }
 0x236   : > { %v780_v27 = vpop.xlane.xlu2 %779 }
 0x237   : > { %v781_v45 = vcvt.f32.s32 %v780_v27  ;;  %975 = vmin.xlane.f32.xlu0 %v2983_v49  ;;  %v1702_v23 = vadd.f32 %v1701_v43, %v1671_v32  ;;  %v4251_v43 = vld [vmem:[#allocation8_spill] sm:$0xff] }
 0x238   : > { %v827_v20 = vand.u32 65535, %v4251_v43  ;;  %v1023_v43 = vand.u32 65535, %v3025_v19 }
 0x239   : > { %v784_v18 = vadd.s32 %v783_v34, %v781_v45  ;;  %1003 = vmin.xlane.f32.xlu1 %v1002_v26  ;;  %v1080_v26 = vshra.s32 %v3345_v40, 16 }
 0x23a   : > { %2204 = vmatmul.msk.f32.gmra.mxu1 %vm1153_vm10, %v4250_v6 }
 0x23b   : > { %1315 = vst.msk [vmem:[%s3171_s17 + $0x28] sm:$0xff] %vm1309_vm9, %v784_v18  ;;  %vm1154_vm13 = vcmp.eq.s32.totalorder %v2786_v59, %v784_v18  ;;  %v810_v18 = vcvt.f32.s32 %v3053_v39  ;;  %v1051_v39 = vand.u32 65535, %v3092_v31  ;;  %v1025_v31 = vcvt.s32.f32 %v1023_v43 }
 0x23c   : > { %v2173_v49 = vsel %vm1154_vm13, 1.0, %v4248_v8  ;;  %v3333_v61 = vpop.xlane.xlu0 %873 }
 0x23d   : > { %v2278_v25 = vpack.c.bf16 %v2173_v49, %v2172_v37  ;;  %v1672_v55 = vmul.f32 %v3312_v62, %v2173_v49  ;;  %v829_v37 = vcvt.s32.f32 %v827_v20  ;;  %vm875_vm2 = vcmp.eq.f32.partialorder %v3055_v36, %v3333_v61 }
 0x23e   : > { %v3323_v47 = vpop.xlane.xlu2 %859  ;;  %v3355_v36 = vcvt.s32.f32 %v1080_v26  ;;  %v811_v49 = vshll.u32 %v810_v18, 16  ;;  %v1512_v26 = vadd.s32 48, %v3180_v46 }
 0x23f   : > { %821 = vmin.xlane.f32.xlu0 %v3069_v42  ;;  %vm861_vm15 = vcmp.eq.f32.partialorder %v3058_v38, %v3323_v47  ;;  %2320 = vst [vmem:[%s3244_s22 + $0x10] sm:$0xff] %v2278_v25   ;;  %v3329_v51 = vadd.f32 %v1702_v23, %v1672_v55  ;;  %v964_v42 = vcvt.f32.s32 %v2958_v17  ;;  %v4252_v38 = vld [vmem:[#allocation9_spill] sm:$0xff]  ;;  %v632_v17 = vpop.xlane.xlu1 %631  ;;  %v876_v23 = vsel %vm875_vm2, %v871_v21, inf }
 0x240   : > { %v862_v3 = vsel %vm861_vm15, %v857_v56, inf  ;;  %vm833_vm1 = vcmp.eq.f32.partialorder %v4252_v38, %v3157_v22  ;;  %vm667_vm3 = vcmp.eq.f32.partialorder %v3035_v35, %v632_v17  ;;  %v1053_v56 = vcvt.s32.f32 %v1051_v39 }
 0x241   : > { %849 = vmin.xlane.f32.xlu1 %v848_v29  ;;  %863 = vmin.xlane.f32.xlu2 %v862_v3  ;;  %v834_v27 = vsel %vm833_vm1, %v829_v37, inf  ;;  %v965_v34 = vshll.u32 %v964_v42, 16  ;;  %v3358_v53 = vsel %vm667_vm3, %v2786_v59, 128  ;;  %v1030_v29 = vsel %vm1029_vm5, %v1025_v31, inf }
 0x242   : > { %2205 = vmatmul.msk.f32.gmra.mxu1 %vm1154_vm13, %v4250_v6  ;;  %v1122_v0 = vshra.s32 %v3358_v53, 16  ;;  %v908_v3 = vcvt.f32.s32 %v3152_v63  ;;  %v1545_v39 = vadd.s32 %v3190_v57, %v1512_v26  ;;  %v883_v26 = vand.u32 65535, %v3215_v14 }
 0x244   : > { %v3368_v35 = vcvt.s32.f32 %v1122_v0  ;;  %v909_v42 = vshll.u32 %v908_v3, 16  ;;  %vm1577_vm11 = vcmp.lt.s32.totalorder %v1545_v39, 512 }
 0x245   : > { %v3430_v3 = vsel %vm1577_vm11, 1.0, %v4248_v8 }
 0x246   : > { %v962_v32 = vpop.xlane.xlu2 %961 }
 0x247   : > { %v963_v45 = vcvt.f32.s32 %v962_v32  ;;  %835 = vmin.xlane.f32.xlu0 %v834_v27  ;;  %v922_v32 = vcvt.f32.s32 %v3159_v4 }
 0x249   : > { %v3347_v50 = vadd.s32 %v965_v34, %v963_v45  ;;  %877 = vmin.xlane.f32.xlu2 %v876_v23 }
 0x24b   : > { %1328 = vst.msk [vmem:[%s3171_s17 + $0x90] sm:$0xff] %vm1309_vm9, %v3347_v50 }
 0x24e   : > { %v808_v7 = vpop.xlane.xlu2 %807 }
 0x24f   : > { %v809_v25 = vcvt.f32.s32 %v808_v7  ;;  %1083 = vmin.xlane.f32.xlu0 %v3355_v36 }
 0x251   : > { %v3361_v55 = vadd.s32 %v811_v49, %v809_v25  ;;  %v1513_v49 = vadd.s32 56, %v3180_v46  ;;  %v796_v25 = vcvt.f32.s32 %v3150_v24  ;;  %v1037_v24 = vand.u32 65535, %v3195_v33 }
 0x253   : > { %1317 = vst.msk [vmem:[%s3171_s17 + $0x38] sm:$0xff] %vm1309_vm9, %v3361_v55  ;;  %v797_v43 = vshll.u32 %v796_v25, 16  ;;  %vm1156_vm13 = vcmp.eq.s32.totalorder %v2786_v59, %v3361_v55  ;;  %v950_v55 = vcvt.f32.s32 %v3192_v48  ;;  %v4255_v48 = vld [vmem:[#allocation11_spill] sm:$0xff] }
 0x254   : > { %v2175_v33 = vsel %vm1156_vm13, 1.0, %v4248_v8 }
 0x256   : > { %v3370_v1 = vpop.xlane.xlu2 %1055 }
 0x257   : > { %1125 = vmin.xlane.f32.xlu0 %v3368_v35  ;;  %vm1057_vm4 = vcmp.eq.f32.partialorder %v3100_v28, %v3370_v1  ;;  %v923_v28 = vshll.u32 %v922_v32, 16 }
 0x258   : > { %v1058_v20 = vsel %vm1057_vm4, %v1053_v56, inf }
 0x259   : > { %1059 = vmin.xlane.f32.xlu2 %v1058_v20 }
 0x25f   : > { %1031 = vmin.xlane.f32.xlu0 %v1030_v29  ;;  %v3427_v29 = vpop.xlane.xlu2 %1069 }
 0x260   : > { %vm1071_vm1 = vcmp.eq.f32.partialorder %v3121_v11, %v3427_v29 }
 0x274   : > { %v906_v2 = vpop.xlane.xlu1 %905 }
 0x275   : > { %v907_v38 = vcvt.f32.s32 %v906_v2 }
 0x277   : > { %v910_v37 = vadd.s32 %v909_v42, %v907_v38 }
 0x279   : > { %1324 = vst.msk [vmem:[%s3171_s17 + $0x70] sm:$0xff] %vm1309_vm9, %v910_v37  ;;  %vm1163_vm6 = vcmp.eq.s32.totalorder %v2786_v59, %v910_v37 }
 0x27a   : > { %2214 = vmatmul.msk.f32.vlgmr.msra.gmra.mxu2 %vm1163_vm6, %v4250_v6  ;;  %v3395_v45 = vsel %vm1163_vm6, 1.0, %v4248_v8  ;;  %vm1167_vm6 = vcmp.eq.s32.totalorder %v2786_v59, %v3347_v50  ;;  %v1515_v50 = vadd.s32 72, %v3180_v46 }
 0x27c   : > { %v628_v19 = vpop.xlane.xlu1 %627  ;;  %v920_v15 = vpop.xlane.xlu0 %919 }
 0x27d   : > { %vm665_vm7 = vcmp.eq.f32.partialorder %v2768_v52, %v628_v19  ;;  %v921_v63 = vcvt.f32.s32 %v920_v15  ;;  %v1039_v15 = vcvt.s32.f32 %v1037_v24  ;;  %v4254_v24 = vld [vmem:[#allocation13_spill] sm:$0xff] }
 0x27e   : > { %v3386_v27 = vsel %vm665_vm7, %v2786_v59, 128 }
 0x27f   : > { %v924_v21 = vadd.s32 %v923_v28, %v921_v63  ;;  %v1094_v34 = vshra.s32 %v3386_v27, 16 }
 0x281   : > { %1325 = vst.msk [vmem:[%s3171_s17 + $0x78] sm:$0xff] %vm1309_vm9, %v924_v21  ;;  %vm1164_vm8 = vcmp.eq.s32.totalorder %v2786_v59, %v924_v21  ;;  %v3392_v4 = vcvt.s32.f32 %v1094_v34  ;;  %v936_v34 = vcvt.f32.s32 %v3242_v54 }
 0x282   : > { %v3398_v17 = vsel %vm1164_vm8, 1.0, %v4248_v8  ;;  %2215 = vmatmul.msk.f32.gmra.mxu2 %vm1164_vm8, %v4250_v6 }
 0x283   : > { %v2293_v52 = vpack.c.bf16 %v3398_v17, %v3395_v45  ;;  %1097 = vmin.xlane.f32.xlu1 %v3392_v4  ;;  %v937_v25 = vshll.u32 %v936_v34, 16 }
 0x284   : > { %v634_v23 = vpop.xlane.xlu1 %633 }
 0x285   : > { %2325 = vst [vmem:[%s3244_s22 + $0x38] sm:$0xff] %v2293_v52   ;;  %vm668_vm10 = vcmp.eq.f32.partialorder %v3165_v9, %v634_v23  ;;  %v1546_v9 = vadd.s32 %v3190_v57, %v1513_v49  ;;  %v1065_v23 = vand.u32 65535, %v3109_v30  ;;  %v2417_v49 = vld [vmem:[%s2647_s19] sm:$0xff]  ;;  %v885_v30 = vcvt.s32.f32 %v883_v26 }
 0x286   : > { %v3408_v18 = vsel %vm668_vm10, %v2786_v59, 128  ;;  %v4257_v26 = vld [vmem:[#allocation15_spill] sm:$0xff] }
 0x287   : > { %v1136_v7 = vshra.s32 %v3408_v18, 16  ;;  %vm1578_vm14 = vcmp.lt.s32.totalorder %v1546_v9, 512  ;;  %v1067_v14 = vcvt.s32.f32 %v1065_v23  ;;  %v4256_v23 = vld [vmem:[#allocation14_spill] sm:$0xff] }
 0x288   : > { %v3444_v38 = vsel %vm1578_vm14, 1.0, %v4248_v8 }
 0x289   : > { %v3413_v0 = vcvt.s32.f32 %v1136_v7  ;;  %v1674_v63 = vmul.f32 %v3444_v38, %v2175_v33  ;;  %v3459_v7 = vpop.xlane.xlu2 %1111 }
 0x28a   : > { %vm1113_vm4 = vcmp.eq.f32.partialorder %v4256_v23, %v3459_v7 }
 0x28b   : > { %1139 = vmin.xlane.f32.xlu1 %v3413_v0 }
 0x28c   : > { %v794_v56 = vpop.xlane.xlu1 %793 }
 0x28d   : > { %v795_v20 = vcvt.f32.s32 %v794_v56 }
 0x28f   : > { %v798_v31 = vadd.s32 %v797_v43, %v795_v20  ;;  %v1072_v20 = vsel %vm1071_vm1, %v1067_v14, inf }
 0x291   : > { %1316 = vst.msk [vmem:[%s3171_s17 + $0x30] sm:$0xff] %vm1309_vm9, %v798_v31  ;;  %v1375_v2 = vpop.f32.mrf.mxu1  ;;  %vm1155_vm15 = vcmp.eq.s32.totalorder %v2786_v59, %v798_v31  ;;  %v1020_v31 = vcvt.f32.s32 %v3274_v60  ;;  %v951_v60 = vshll.u32 %v950_v55, 16 }
 0x292   : > { %1472 = vst.msk [vmem:[%s3422_s8] sm:$0xff] %vm1471_vm12, %v1375_v2  ;;  %v2174_v42 = vsel %vm1155_vm15, 1.0, %v4248_v8  ;;  %2206 = vmatmul.msk.f32.gmra.mxu1 %vm1155_vm15, %v4250_v6 }
 0x293   : > { %v1673_v37 = vmul.f32 %v3430_v3, %v2174_v42  ;;  %v2281_v32 = vpack.c.bf16 %v2175_v33, %v2174_v42  ;;  %v2418_v42 = vld [vmem:[%s2647_s19 + $0x8] sm:$0xff]  ;;  %v992_v33 = vcvt.f32.s32 %v4255_v48 }
 0x294   : > { %v3447_v19 = vpop.xlane.xlu1 %1041 }
 0x295   : > { %v1704_v28 = vadd.f32 %v3329_v51, %v1673_v37  ;;  %vm1043_vm0 = vcmp.eq.f32.partialorder %v3212_v41, %v3447_v19  ;;  %2321 = vst [vmem:[%s3244_s22 + $0x18] sm:$0xff] %v2281_v32   ;;  %v1737_v51 = vsub.f32 %v1375_v2, %v2417_v49  ;;  %v1107_v2 = vand.u32 65535, %v4254_v24 }
 0x296   : > { %v1044_v21 = vsel %vm1043_vm0, %v1039_v15, inf }
 0x297   : > { %1045 = vmin.xlane.f32.xlu0 %v1044_v21  ;;  %v3455_v52 = vadd.f32 %v1704_v28, %v1674_v63  ;;  %v1769_v56 = vmul.f32 %v1737_v51, %v1737_v51  ;;  %v1021_v63 = vshll.u32 %v1020_v31, 16 }
 0x299   : > { %v1801_v37 = vmul.f32 %v3225_v58, %v1769_v56 }
 0x29a   : > { %2207 = vmatmul.msk.f32.gmra.mxu1 %vm1156_vm13, %v4250_v6  ;;  %v934_v41 = vpop.xlane.xlu0 %933 }
 0x29b   : > { %v935_v54 = vcvt.f32.s32 %v934_v41  ;;  %v1109_v41 = vcvt.s32.f32 %v1107_v2  ;;  %v1833_v14 = vsel %vm1471_vm12, %v1801_v37, 0.0 }
 0x29c   : > { %v3468_v39 = vpop.xlane.xlu1 %887 }
 0x29d   : > { %v938_v9 = vadd.s32 %v937_v25, %v935_v54  ;;  %vm889_vm2 = vcmp.eq.f32.partialorder %v3249_v44, %v3468_v39  ;;  %v993_v25 = vshll.u32 %v992_v33, 16  ;;  %v1114_v56 = vsel %vm1113_vm4, %v1109_v41, inf }
 0x29e   : > { %v890_v43 = vsel %vm889_vm2, %v885_v30, inf  ;;  %v1006_v33 = vcvt.f32.s32 %v3204_v13  ;;  %v838_v41 = vcvt.f32.s32 %v3157_v22  ;;  %v2420_v22 = vld [vmem:[%s2647_s19 + $0x18] sm:$0xff] }
 0x29f   : > { %1326 = vst.msk [vmem:[%s3171_s17 + $0x80] sm:$0xff] %vm1309_vm9, %v938_v9  ;;  %v1378_v11 = vpop.f32.mrf.mxu1  ;;  %891 = vmin.xlane.f32.xlu1 %v890_v43  ;;  %1073 = vmin.xlane.f32.xlu0 %v1072_v20  ;;  %vm1165_vm3 = vcmp.eq.s32.totalorder %v2786_v59, %v938_v9  ;;  %v4258_v43 = vld [vmem:[#allocation10_spill] sm:$0xff] }
 0x2a0   : > { %1473 = vst.msk [vmem:[%s3422_s8 + $0x8] sm:$0xff] %vm1471_vm12, %v1378_v11  ;;  %v1738_v44 = vsub.f32 %v1378_v11, %v2418_v42  ;;  %2216 = vmatmul.msk.f32.gmra.mxu2 %vm1165_vm3, %v4250_v6  ;;  %v978_v20 = vcvt.f32.s32 %v4258_v43  ;;  %v3503_v2 = vsel %vm1165_vm3, 1.0, %v4248_v8  ;;  %v2419_v42 = vld [vmem:[%s2647_s19 + $0x10] sm:$0xff]  ;;  %v1007_v13 = vshll.u32 %v1006_v33, 16 }
 0x2a2   : > { %v1770_v32 = vmul.f32 %v1738_v44, %v1738_v44  ;;  %v1018_v15 = vpop.xlane.xlu2 %1017  ;;  %v948_v28 = vpop.xlane.xlu0 %947 }
 0x2a3   : > { %v1019_v21 = vcvt.f32.s32 %v1018_v15  ;;  %v949_v34 = vcvt.f32.s32 %v948_v28  ;;  %v979_v15 = vshll.u32 %v978_v20, 16  ;;  %v3544_v20 = vsel %vm1167_vm6, 1.0, %v4248_v8 }
 0x2a4   : > { %v1802_v49 = vmul.f32 %v4257_v26, %v1770_v32  ;;  %v990_v51 = vpop.xlane.xlu1 %989  ;;  %v1514_v32 = vadd.s32 64, %v3180_v46 }
 0x2a5   : > { %v3489_v54 = vadd.s32 %v1021_v63, %v1019_v21  ;;  %v952_v58 = vadd.s32 %v951_v60, %v949_v34  ;;  %v991_v30 = vcvt.f32.s32 %v990_v51  ;;  %v4259_v63 = vld [vmem:[#allocation16_spill] sm:$0xff] }
 0x2a6   : > { %v1834_v55 = vsel %vm1471_vm12, %v1802_v49, 0.0  ;;  %v4260_v49 = vld [vmem:[#allocation12_spill] sm:$0xff] }
 0x2a7   : > { %v1835_v31 = vadd.f32 %v1834_v55, %v1833_v14  ;;  %1332 = vst.msk [vmem:[%s3171_s17 + $0xb0] sm:$0xff] %vm1309_vm9, %v3489_v54  ;;  %v3497_v11 = vadd.s32 %v993_v25, %v991_v30  ;;  %1115 = vmin.xlane.f32.xlu1 %v1114_v56  ;;  %v1381_v24 = vpop.f32.mrf.mxu1  ;;  %vm1166_vm5 = vcmp.eq.s32.totalorder %v2786_v59, %v952_v58  ;;  %v824_v51 = vcvt.f32.s32 %v4260_v49 }
 0x2a8   : > { %1327 = vst.msk [vmem:[%s3171_s17 + $0x88] sm:$0xff] %vm1309_vm9, %v952_v58  ;;  %v1739_v44 = vsub.f32 %v1381_v24, %v2419_v42  ;;  %v3509_v48 = vsel %vm1166_vm5, 1.0, %v4248_v8  ;;  %2217 = vmatmul.msk.f32.gmra.mxu2 %vm1166_vm5, %v4250_v6  ;;  %v1547_v58 = vadd.s32 %v3190_v57, %v1514_v32  ;;  %v852_v56 = vcvt.f32.s32 %v3210_v12 }
 0x2a9   : > { %1330 = vst.msk [vmem:[%s3171_s17 + $0xa0] sm:$0xff] %vm1309_vm9, %v3497_v11  ;;  %v2296_v60 = vpack.c.bf16 %v3509_v48, %v3503_v2  ;;  %vm1169_vm8 = vcmp.eq.s32.totalorder %v2786_v59, %v3497_v11  ;;  %v839_v32 = vshll.u32 %v838_v41, 16  ;;  %v1548_v41 = vadd.s32 %v3190_v57, %v1515_v50 }
 0x2aa   : > { %1474 = vst.msk [vmem:[%s3422_s8 + $0x10] sm:$0xff] %vm1471_vm12, %v1381_v24  ;;  %v1771_v9 = vmul.f32 %v1739_v44, %v1739_v44  ;;  %v976_v37 = vpop.xlane.xlu0 %975  ;;  %v3568_v33 = vsel %vm1169_vm8, 1.0, %v4248_v8  ;;  %vm1579_vm11 = vcmp.lt.s32.totalorder %v1547_v58, 512 }
 0x2ab   : > { %2326 = vst [vmem:[%s3244_s22 + $0x40] sm:$0xff] %v2296_v60   ;;  %v977_v28 = vcvt.f32.s32 %v976_v37  ;;  %v825_v60 = vshll.u32 %v824_v51, 16  ;;  %v3584_v58 = vsel %vm1579_vm11, 1.0, %v4248_v8  ;;  %vm1580_vm0 = vcmp.lt.s32.totalorder %v1548_v41, 512 }
 0x2ac   : > { %v1803_v21 = vmul.f32 %v4259_v63, %v1771_v9  ;;  %v1004_v34 = vpop.xlane.xlu1 %1003 }
 0x2ad   : > { %v980_v23 = vadd.s32 %v979_v15, %v977_v28  ;;  %v1005_v26 = vcvt.f32.s32 %v1004_v34  ;;  %v853_v15 = vshll.u32 %v852_v56, 16  ;;  %v1516_v34 = vadd.s32 80, %v3180_v46 }
 0x2ae   : > { %v1836_v25 = vsel %vm1471_vm12, %v1803_v21, 0.0 }
 0x2af   : > { %v1837_v30 = vadd.f32 %v1836_v25, %v1835_v31  ;;  %1329 = vst.msk [vmem:[%s3171_s17 + $0x98] sm:$0xff] %vm1309_vm9, %v980_v23  ;;  %v3531_v14 = vadd.s32 %v1007_v13, %v1005_v26  ;;  %v1384_v55 = vpop.f32.mrf.mxu1  ;;  %vm1168_vm7 = vcmp.eq.s32.totalorder %v2786_v59, %v980_v23  ;;  %v866_v31 = vcvt.f32.s32 %v3323_v47 }
 0x2b0   : > { %1475 = vst.msk [vmem:[%s3422_s8 + $0x18] sm:$0xff] %vm1471_vm12, %v1384_v55  ;;  %v1740_v43 = vsub.f32 %v1384_v55, %v2420_v22  ;;  %2218 = vmatmul.msk.f32.gmra.mxu2 %vm1167_vm6, %v4250_v6  ;;  %v3553_v12 = vsel %vm1168_vm7, 1.0, %v4248_v8 }
 0x2b1   : > { %1331 = vst.msk [vmem:[%s3171_s17 + $0xa8] sm:$0xff] %vm1309_vm9, %v3531_v14  ;;  %v2299_v24 = vpack.c.bf16 %v3553_v12, %v3544_v20  ;;  %vm1170_vm10 = vcmp.eq.s32.totalorder %v2786_v59, %v3531_v14  ;;  %v867_v13 = vshll.u32 %v866_v31, 16  ;;  %v880_v31 = vcvt.f32.s32 %v3333_v61 }
 0x2b2   : > { %v1772_v42 = vmul.f32 %v1740_v43, %v1740_v43  ;;  %v822_v44 = vpop.xlane.xlu0 %821  ;;  %v3574_v47 = vsel %vm1170_vm10, 1.0, %v4248_v8  ;;  %v1518_v61 = vadd.s32 96, %v3180_v46  ;;  %v1034_v14 = vcvt.f32.s32 %v3304_v10 }
 0x2b3   : > { %v823_v9 = vcvt.f32.s32 %v822_v44  ;;  %2327 = vst [vmem:[%s3244_s22 + $0x48] sm:$0xff] %v2299_v24   ;;  %v2302_v37 = vpack.c.bf16 %v3574_v47, %v3568_v33  ;;  %v2421_v24 = vld [vmem:[%s2647_s19 + $0x20] sm:$0xff] }
 0x2b4   : > { %v1804_v28 = vmul.f32 %v3265_v16, %v1772_v42  ;;  %v850_v63 = vpop.xlane.xlu1 %849  ;;  %v864_v21 = vpop.xlane.xlu2 %863  ;;  %v1517_v16 = vadd.s32 88, %v3180_v46 }
 0x2b5   : > { %v826_v26 = vadd.s32 %v825_v60, %v823_v9  ;;  %v851_v49 = vcvt.f32.s32 %v850_v63  ;;  %v865_v51 = vcvt.f32.s32 %v864_v21  ;;  %2328 = vst [vmem:[%s3244_s22 + $0x50] sm:$0xff] %v2302_v37  }
 0x2b6   : > { %v1838_v25 = vsel %vm1471_vm12, %v1804_v28, 0.0 }
 0x2b7   : > { %v1839_v55 = vadd.f32 %v1838_v25, %v1837_v30  ;;  %1318 = vst.msk [vmem:[%s3171_s17 + $0x40] sm:$0xff] %vm1309_vm9, %v826_v26  ;;  %v3590_v56 = vadd.s32 %v853_v15, %v851_v49  ;;  %v3592_v22 = vadd.s32 %v867_v13, %v865_v51  ;;  %v1387_v43 = vpop.f32.mrf.mxu1  ;;  %vm1157_vm13 = vcmp.eq.s32.totalorder %v2786_v59, %v826_v26 }
 0x2b8   : > { %1476 = vst.msk [vmem:[%s3422_s8 + $0x20] sm:$0xff] %vm1471_vm12, %v1387_v43  ;;  %v1741_v42 = vsub.f32 %v1387_v43, %v2421_v24  ;;  %v2176_v44 = vsel %vm1157_vm13, 1.0, %v4248_v8  ;;  %2208 = vmatmul.msk.f32.gmra.mxu1 %vm1157_vm13, %v4250_v6  ;;  %2219 = vmatmul.msk.f32.gmra.mxu2 %vm1168_vm7, %v4250_v6  ;;  %v1549_v30 = vadd.s32 %v3190_v57, %v1516_v34  ;;  %v881_v34 = vshll.u32 %v880_v31, 16 }
 0x2b9   : > { %1320 = vst.msk [vmem:[%s3171_s17 + $0x50] sm:$0xff] %vm1309_vm9, %v3590_v56  ;;  %v1675_v50 = vmul.f32 %v3584_v58, %v2176_v44  ;;  %vm1159_vm14 = vcmp.eq.s32.totalorder %v2786_v59, %v3590_v56  ;;  %vm1160_vm15 = vcmp.eq.s32.totalorder %v2786_v59, %v3592_v22  ;;  %v1550_v15 = vadd.s32 %v3190_v57, %v1517_v16 }
 0x2ba   : > { %1321 = vst.msk [vmem:[%s3171_s17 + $0x58] sm:$0xff] %vm1309_vm9, %v3592_v22  ;;  %v1773_v23 = vmul.f32 %v1741_v42, %v1741_v42  ;;  %v836_v60 = vpop.xlane.xlu0 %835  ;;  %v2178_v9 = vsel %vm1159_vm14, 1.0, %v4248_v8  ;;  %v2179_v37 = vsel %vm1160_vm15, 1.0, %v4248_v8  ;;  %vm1581_vm1 = vcmp.lt.s32.totalorder %v1549_v30, 512 }
 0x2bb   : > { %v1706_v28 = vadd.f32 %v3455_v52, %v1675_v50  ;;  %v837_v63 = vcvt.f32.s32 %v836_v60  ;;  %v2287_v21 = vpack.c.bf16 %v2179_v37, %v2178_v9  ;;  %v1551_v25 = vadd.s32 %v3190_v57, %v1518_v61 }
 0x2bc   : > { %v1805_v13 = vmul.f32 %v3290_v5, %v1773_v23  ;;  %v878_v26 = vpop.xlane.xlu2 %877  ;;  %v1079_v16 = vand.u32 65535, %v3345_v40  ;;  %v3633_v43 = vsel %vm1580_vm0, 1.0, %v4248_v8  ;;  %vm1582_vm3 = vcmp.lt.s32.totalorder %v1550_v15, 512 }
 0x2bd   : > { %v840_v49 = vadd.s32 %v839_v32, %v837_v63  ;;  %v879_v51 = vcvt.f32.s32 %v878_v26  ;;  %2323 = vst [vmem:[%s3244_s22 + $0x28] sm:$0xff] %v2287_v21   ;;  %v3653_v32 = vsel %vm1581_vm1, 1.0, %v4248_v8  ;;  %vm1583_vm5 = vcmp.lt.s32.totalorder %v1551_v25, 512 }
 0x2be   : > { %v1840_v52 = vsel %vm1471_vm12, %v1805_v13, 0.0  ;;  %v1081_v50 = vcvt.s32.f32 %v1079_v16  ;;  %v3662_v61 = vsel %vm1582_vm3, 1.0, %v4248_v8  ;;  %v1677_v30 = vmul.f32 %v3653_v32, %v2178_v9 }
 0x2bf   : > { %v3635_v41 = vadd.f32 %v1840_v52, %v1839_v55  ;;  %1319 = vst.msk [vmem:[%s3171_s17 + $0x48] sm:$0xff] %vm1309_vm9, %v840_v49  ;;  %v882_v5 = vadd.s32 %v881_v34, %v879_v51  ;;  %v3639_v31 = vpop.f32.mrf.mxu1  ;;  %vm1158_vm2 = vcmp.eq.s32.totalorder %v2786_v59, %v840_v49  ;;  %v3674_v60 = vsel %vm1583_vm5, 1.0, %v4248_v8 }
 0x2c0   : > { %1477 = vst.msk [vmem:[%s3422_s8 + $0x28] sm:$0xff] %vm1471_vm12, %v3639_v31  ;;  %v2177_v40 = vsel %vm1158_vm2, 1.0, %v4248_v8  ;;  %2209 = vmatmul.msk.f32.gmra.mxu1 %vm1158_vm2, %v4250_v6  ;;  %2220 = vmatmul.msk.f32.gmra.mxu2 %vm1169_vm8, %v4250_v6  ;;  %v1678_v63 = vmul.f32 %v3662_v61, %v2179_v37  ;;  %v1062_v9 = vcvt.f32.s32 %v3370_v1  ;;  %vm1171_vm8 = vcmp.eq.s32.totalorder %v2786_v59, %v3489_v54 }
 0x2c1   : > { %1322 = vst.msk [vmem:[%s3171_s17 + $0x60] sm:$0xff] %vm1309_vm9, %v882_v5  ;;  %v2284_v55 = vpack.c.bf16 %v2177_v40, %v2176_v44  ;;  %v1676_v24 = vmul.f32 %v3633_v43, %v2177_v40  ;;  %vm1161_vm4 = vcmp.eq.s32.totalorder %v2786_v59, %v882_v5  ;;  %v1035_v1 = vshll.u32 %v1034_v14, 16 }
 0x2c2   : > { %v3659_v42 = vpop.xlane.xlu0 %1083  ;;  %v3671_v44 = vsel %vm1161_vm4, 1.0, %v4248_v8  ;;  %v1063_v26 = vshll.u32 %v1062_v9, 16  ;;  %v3712_v54 = vsel %vm1171_vm8, 1.0, %v4248_v8  ;;  %v1093_v52 = vand.u32 65535, %v3386_v27 }
 0x2c3   : > { %2322 = vst [vmem:[%s3244_s22 + $0x20] sm:$0xff] %v2284_v55   ;;  %v1707_v11 = vadd.f32 %v1706_v28, %v1676_v24  ;;  %vm1085_vm6 = vcmp.eq.f32.partialorder %v3355_v36, %v3659_v42  ;;  %v1121_v28 = vand.u32 65535, %v3358_v53  ;;  %v1679_v36 = vmul.f32 %v3674_v60, %v3671_v44 }
 0x2c4   : > { %v1086_v23 = vsel %vm1085_vm6, %v1081_v50, inf  ;;  %v1095_v55 = vcvt.s32.f32 %v1093_v52  ;;  %v1135_v24 = vand.u32 65535, %v3408_v18  ;;  %v1048_v18 = vcvt.f32.s32 %v3447_v19 }
 0x2c5   : > { %1087 = vmin.xlane.f32.xlu2 %v1086_v23  ;;  %v1708_v15 = vadd.f32 %v1707_v11, %v1677_v30  ;;  %v1123_v34 = vcvt.s32.f32 %v1121_v28  ;;  %v1520_v28 = vadd.s32 112, %v3180_v46  ;;  %v1076_v19 = vcvt.f32.s32 %v3427_v29  ;;  %v2423_v29 = vld [vmem:[%s2647_s19 + $0x30] sm:$0xff] }
 0x2c6   : > { %v1137_v30 = vcvt.s32.f32 %v1135_v24  ;;  %v1049_v9 = vshll.u32 %v1048_v18, 16 }
 0x2c7   : > { %v1709_v21 = vadd.f32 %v1708_v15, %v1678_v63  ;;  %v1524_v63 = vadd.s32 144, %v3180_v46 }
 0x2c8   : > { %2210 = vmatmul.msk.f32.gmra.mxu1 %vm1159_vm14, %v4250_v6  ;;  %2221 = vmatmul.msk.f32.gmra.mxu2 %vm1170_vm10, %v4250_v6 }
 0x2c9   : > { %v3689_v37 = vadd.f32 %v1709_v21, %v1679_v36 }
 0x2ca   : > { %v3691_v53 = vpop.xlane.xlu0 %1125 }
 0x2cb   : > { %vm1127_vm7 = vcmp.eq.f32.partialorder %v3368_v35, %v3691_v53 }
 0x2cc   : > { %v1060_v13 = vpop.xlane.xlu2 %1059  ;;  %v1128_v56 = vsel %vm1127_vm7, %v1123_v34, inf }
 0x2cd   : > { %v1061_v49 = vcvt.f32.s32 %v1060_v13  ;;  %1129 = vmin.xlane.f32.xlu0 %v1128_v56  ;;  %v1557_v13 = vadd.s32 %v3190_v57, %v1524_v63 }
 0x2cf   : > { %v3696_v51 = vadd.s32 %v1063_v26, %v1061_v49  ;;  %v1553_v26 = vadd.s32 %v3190_v57, %v1520_v28  ;;  %vm1589_vm0 = vcmp.lt.s32.totalorder %v1557_v13, 512 }
 0x2d0   : > { %2211 = vmatmul.msk.f32.gmra.mxu1 %vm1160_vm15, %v4250_v6  ;;  %2222 = vmatmul.msk.f32.gmra.mxu2 %vm1171_vm8, %v4250_v6 }
 0x2d1   : > { %1335 = vst.msk [vmem:[%s3171_s17 + $0xc8] sm:$0xff] %vm1309_vm9, %v3696_v51  ;;  %vm1174_vm14 = vcmp.eq.s32.totalorder %v2786_v59, %v3696_v51  ;;  %vm1585_vm2 = vcmp.lt.s32.totalorder %v1553_v26, 512 }
 0x2d2   : > { %v1032_v35 = vpop.xlane.xlu0 %1031 }
 0x2d3   : > { %v1033_v25 = vcvt.f32.s32 %v1032_v35  ;;  %v894_v35 = vcvt.f32.s32 %v3468_v39  ;;  %v3775_v39 = vsel %vm1174_vm14, 1.0, %v4248_v8 }
 0x2d5   : > { %v1036_v10 = vadd.s32 %v1035_v1, %v1033_v25 }
 0x2d7   : > { %1333 = vst.msk [vmem:[%s3171_s17 + $0xb8] sm:$0xff] %vm1309_vm9, %v1036_v10  ;;  %vm1172_vm10 = vcmp.eq.s32.totalorder %v2786_v59, %v1036_v10  ;;  %v1522_v10 = vadd.s32 128, %v3180_v46 }
 0x2d8   : > { %2212 = vmatmul.msk.f32.gmra.mxu1 %vm1161_vm4, %v4250_v6  ;;  %v3718_v22 = vsel %vm1172_vm10, 1.0, %v4248_v8  ;;  %2223 = vmatmul.msk.f32.gmra.mxu2 %vm1172_vm10, %v4250_v6 }
 0x2d9   : > { %v2305_v16 = vpack.c.bf16 %v3718_v22, %v3712_v54  ;;  %v1555_v28 = vadd.s32 %v3190_v57, %v1522_v10 }
 0x2db   : > { %2329 = vst [vmem:[%s3244_s22 + $0x58] sm:$0xff] %v2305_v16   ;;  %vm1587_vm5 = vcmp.lt.s32.totalorder %v1555_v28, 512 }
 0x2f6   : > { %v3725_v40 = vpop.xlane.xlu1 %1097 }
 0x2f7   : > { %vm1099_vm11 = vcmp.eq.f32.partialorder %v3392_v4, %v3725_v40  ;;  %v2422_v4 = vld [vmem:[%s2647_s19 + $0x28] sm:$0xff] }
 0x2f8   : > { %v1100_v5 = vsel %vm1099_vm11, %v1095_v55, inf  ;;  %v1742_v15 = vsub.f32 %v3639_v31, %v2422_v4  ;;  %v1519_v31 = vadd.s32 104, %v3180_v46  ;;  %v1077_v55 = vshll.u32 %v1076_v19, 16 }
 0x2f9   : > { %1101 = vmin.xlane.f32.xlu1 %v1100_v5  ;;  %v1523_v5 = vadd.s32 136, %v3180_v46 }
 0x2fa   : > { %v1774_v21 = vmul.f32 %v1742_v15, %v1742_v15  ;;  %v1552_v25 = vadd.s32 %v3190_v57, %v1519_v31  ;;  %v895_v15 = vshll.u32 %v894_v35, 16  ;;  %v1118_v31 = vcvt.f32.s32 %v3459_v7 }
 0x2fb   : > { %v1526_v7 = vadd.s32 160, %v3180_v46 }
 0x2fc   : > { %v1806_v49 = vmul.f32 %v3312_v62, %v1774_v21  ;;  %vm1584_vm1 = vcmp.lt.s32.totalorder %v1552_v25, 512 }
 0x2fd   : > { %v3730_v50 = vpop.f32.mrf.mxu2  ;;  %v3792_v26 = vsel %vm1584_vm1, 1.0, %v4248_v8 }
 0x2fe   : > { %1486 = vst.msk [vmem:[%s3422_s8 + $0x70] sm:$0xff] %vm1471_vm12, %v3730_v50  ;;  %v3735_v11 = vpop.xlane.xlu1 %1139  ;;  %v1842_v24 = vsel %vm1471_vm12, %v1806_v49, 0.0 }
 0x2ff   : > { %vm1141_vm13 = vcmp.eq.f32.partialorder %v3413_v0, %v3735_v11  ;;  %v1521_v0 = vadd.s32 120, %v3180_v46 }
 0x300   : > { %v1142_v27 = vsel %vm1141_vm13, %v1137_v30, inf }
 0x301   : > { %1143 = vmin.xlane.f32.xlu2 %v1142_v27  ;;  %v1554_v14 = vadd.s32 %v3190_v57, %v1521_v0  ;;  %v1843_v0 = vadd.f32 %v1842_v24, %v3635_v41  ;;  %v3799_v41 = vsel %vm1589_vm0, 1.0, %v4248_v8 }
 0x303   : > { %vm1586_vm3 = vcmp.lt.s32.totalorder %v1554_v14, 512  ;;  %v3829_v14 = vsel %vm1587_vm5, 1.0, %v4248_v8 }
 0x304   : > { %v3817_v10 = vsel %vm1586_vm3, 1.0, %v4248_v8 }
 0x305   : > { %v3739_v23 = vpop.f32.mrf.mxu2 }
 0x306   : > { %1487 = vst.msk [vmem:[%s3422_s8 + $0x78] sm:$0xff] %vm1471_vm12, %v3739_v23 }
 0x30a   : > { %v1046_v36 = vpop.xlane.xlu0 %1045 }
 0x30b   : > { %v1047_v34 = vcvt.f32.s32 %v1046_v36  ;;  %v1525_v36 = vadd.s32 152, %v3180_v46 }
 0x30d   : > { %v1050_v56 = vadd.s32 %v1049_v9, %v1047_v34 }
 0x30f   : > { %1334 = vst.msk [vmem:[%s3171_s17 + $0xc0] sm:$0xff] %vm1309_vm9, %v1050_v56  ;;  %v1393_v1 = vpop.f32.mrf.mxu1  ;;  %vm1173_vm15 = vcmp.eq.s32.totalorder %v2786_v59, %v1050_v56  ;;  %v1556_v56 = vadd.s32 %v3190_v57, %v1523_v5  ;;  %v1527_v5 = vadd.s32 168, %v3180_v46 }
 0x310   : > { %1478 = vst.msk [vmem:[%s3422_s8 + $0x30] sm:$0xff] %vm1471_vm12, %v1393_v1  ;;  %v1743_v16 = vsub.f32 %v1393_v1, %v2423_v29  ;;  %v3768_v62 = vsel %vm1173_vm15, 1.0, %v4248_v8  ;;  %2224 = vmatmul.msk.f32.gmra.mxu2 %vm1173_vm15, %v4250_v6  ;;  %v2424_v1 = vld [vmem:[%s2647_s19 + $0x38] sm:$0xff]  ;;  %v1558_v29 = vadd.s32 %v3190_v57, %v1525_v36 }
 0x311   : > { %v2308_v52 = vpack.c.bf16 %v3775_v39, %v3768_v62  ;;  %vm1588_vm6 = vcmp.lt.s32.totalorder %v1556_v56, 512  ;;  %v1560_v36 = vadd.s32 %v3190_v57, %v1527_v5  ;;  %v1530_v56 = vadd.s32 192, %v3180_v46 }
 0x312   : > { %v1775_v30 = vmul.f32 %v1743_v16, %v1743_v16  ;;  %v892_v27 = vpop.xlane.xlu1 %891  ;;  %v1074_v4 = vpop.xlane.xlu0 %1073  ;;  %vm1590_vm7 = vcmp.lt.s32.totalorder %v1558_v29, 512 }
 0x313   : > { %v893_v18 = vcvt.f32.s32 %v892_v27  ;;  %v1075_v63 = vcvt.f32.s32 %v1074_v4  ;;  %2330 = vst [vmem:[%s3244_s22 + $0x60] sm:$0xff] %v2308_v52   ;;  %v1682_v4 = vmul.f32 %v3817_v10, %v3398_v17  ;;  %v1529_v17 = vadd.s32 184, %v3180_v46 }
 0x314   : > { %v1807_v21 = vmul.f32 %v3430_v3, %v1775_v30  ;;  %v3795_v3 = vsel %vm1585_vm2, 1.0, %v4248_v8  ;;  %vm1592_vm13 = vcmp.lt.s32.totalorder %v1560_v36, 512  ;;  %v1563_v29 = vadd.s32 %v3190_v57, %v1530_v56 }
 0x315   : > { %v896_v9 = vadd.s32 %v895_v15, %v893_v18  ;;  %v3786_v34 = vadd.s32 %v1077_v55, %v1075_v63  ;;  %v1119_v55 = vshll.u32 %v1118_v31, 16  ;;  %v1681_v51 = vmul.f32 %v3795_v3, %v3395_v45 }
 0x316   : > { %v1844_v19 = vsel %vm1471_vm12, %v1807_v21, 0.0  ;;  %v1559_v15 = vadd.s32 %v3190_v57, %v1526_v7  ;;  %v1528_v18 = vadd.s32 176, %v3180_v46  ;;  %v3839_v45 = vsel %vm1588_vm6, 1.0, %v4248_v8 }
 0x317   : > { %v1845_v49 = vadd.f32 %v1844_v19, %v1843_v0  ;;  %1323 = vst.msk [vmem:[%s3171_s17 + $0x68] sm:$0xff] %vm1309_vm9, %v896_v9  ;;  %v1396_v35 = vpop.f32.mrf.mxu1  ;;  %vm1162_vm4 = vcmp.eq.s32.totalorder %v2786_v59, %v896_v9  ;;  %vm1175_vm8 = vcmp.eq.s32.totalorder %v2786_v59, %v3786_v34  ;;  %v1562_v7 = vadd.s32 %v3190_v57, %v1529_v17 }
 0x318   : > { %1336 = vst.msk [vmem:[%s3171_s17 + $0xd0] sm:$0xff] %vm1309_vm9, %v3786_v34  ;;  %v1744_v25 = vsub.f32 %v1396_v35, %v2424_v1  ;;  %v2181_v13 = vsel %vm1162_vm4, 1.0, %v4248_v8  ;;  %2213 = vmatmul.msk.f32.gmra.mxu1 %vm1162_vm4, %v4250_v6  ;;  %2225 = vmatmul.msk.f32.gmra.mxu2 %vm1174_vm14, %v4250_v6  ;;  %vm1591_vm11 = vcmp.lt.s32.totalorder %v1559_v15, 512  ;;  %vm1595_vm0 = vcmp.lt.s32.totalorder %v1563_v29, 512 }
 0x319   : > { %1479 = vst.msk [vmem:[%s3422_s8 + $0x38] sm:$0xff] %vm1471_vm12, %v1396_v35  ;;  %v2290_v16 = vpack.c.bf16 %v2181_v13, %v3671_v44  ;;  %v1680_v52 = vmul.f32 %v3792_v26, %v2181_v13  ;;  %v3873_v35 = vsel %vm1590_vm7, 1.0, %v4248_v8  ;;  %vm1594_vm15 = vcmp.lt.s32.totalorder %v1562_v7, 512 }
 0x31a   : > { %v1776_v24 = vmul.f32 %v1744_v25, %v1744_v25  ;;  %v1116_v30 = vpop.xlane.xlu1 %1115  ;;  %v1531_v25 = vadd.s32 200, %v3180_v46  ;;  %v2194_v17 = vsel %vm1175_vm8, 1.0, %v4248_v8  ;;  %v1090_v34 = vcvt.f32.s32 %v3659_v42 }
 0x31b   : > { %2324 = vst [vmem:[%s3244_s22 + $0x30] sm:$0xff] %v2290_v16   ;;  %v1711_v27 = vadd.f32 %v3689_v37, %v1680_v52  ;;  %v1117_v44 = vcvt.f32.s32 %v1116_v30  ;;  %v1683_v37 = vmul.f32 %v3829_v14, %v3503_v2  ;;  %v1684_v2 = vmul.f32 %v3839_v45, %v3509_v48 }
 0x31c   : > { %v1808_v63 = vmul.f32 %v3444_v38, %v1776_v24  ;;  %v1561_v38 = vadd.s32 %v3190_v57, %v1528_v18  ;;  %v3880_v48 = vsel %vm1591_vm11, 1.0, %v4248_v8  ;;  %v1532_v52 = vadd.s32 208, %v3180_v46 }
 0x31d   : > { %v1712_v28 = vadd.f32 %v1711_v27, %v1681_v51  ;;  %v3841_v21 = vadd.s32 %v1119_v55, %v1117_v44  ;;  %v3890_v55 = vsel %vm1592_vm13, 1.0, %v4248_v8  ;;  %v1687_v5 = vmul.f32 %v3880_v48, %v3568_v33 }
 0x31e   : > { %v1846_v0 = vsel %vm1471_vm12, %v1808_v63, 0.0  ;;  %vm1593_vm14 = vcmp.lt.s32.totalorder %v1561_v38, 512  ;;  %v1564_v24 = vadd.s32 %v3190_v57, %v1531_v25  ;;  %v1565_v44 = vadd.s32 %v3190_v57, %v1532_v52 }
 0x31f   : > { %v3848_v9 = vadd.f32 %v1846_v0, %v1845_v49  ;;  %v1713_v31 = vadd.f32 %v1712_v28, %v1682_v4  ;;  %1339 = vst.msk [vmem:[%s3171_s17 + $0xe8] sm:$0xff] %vm1309_vm9, %v3841_v21  ;;  %vm1178_vm10 = vcmp.eq.s32.totalorder %v2786_v59, %v3841_v21  ;;  %v1685_v49 = vmul.f32 %v3799_v41, %v3544_v20 }
 0x320   : > { %2226 = vmatmul.msk.f32.gmra.mxu2 %vm1175_vm8, %v4250_v6  ;;  %2229 = vmatmul.msk.f32.vlgmr.msrb.gmra.mxu3 %vm1178_vm10, %v4250_v6  ;;  %v1686_v20 = vmul.f32 %v3873_v35, %v3553_v12  ;;  %v3896_v51 = vsel %vm1593_vm14, 1.0, %v4248_v8  ;;  %v1688_v12 = vmul.f32 %v3890_v55, %v3574_v47  ;;  %v3902_v4 = vsel %vm1594_vm15, 1.0, %v4248_v8 }
 0x321   : > { %v1714_v19 = vadd.f32 %v1713_v31, %v1683_v37  ;;  %v1689_v33 = vmul.f32 %v3896_v51, %v3712_v54  ;;  %vm1596_vm1 = vcmp.lt.s32.totalorder %v1564_v24, 512  ;;  %v3909_v63 = vsel %vm1595_vm0, 1.0, %v4248_v8 }
 0x322   : > { %v1690_v47 = vmul.f32 %v3902_v4, %v3718_v22  ;;  %vm1597_vm2 = vcmp.lt.s32.totalorder %v1565_v44, 512  ;;  %v3917_v37 = vsel %vm1596_vm1, 1.0, %v4248_v8  ;;  %v1691_v54 = vmul.f32 %v3909_v63, %v3768_v62 }
 0x323   : > { %v1715_v1 = vadd.f32 %v1714_v19, %v1684_v2  ;;  %v3877_v13 = vpop.f32.mrf.mxu2  ;;  %v3926_v0 = vsel %vm1597_vm2, 1.0, %v4248_v8  ;;  %v1692_v22 = vmul.f32 %v3917_v37, %v3775_v39  ;;  %v1533_v38 = vadd.s32 216, %v3180_v46  ;;  %v2425_v39 = vld [vmem:[%s2647_s19 + $0x40] sm:$0xff] }
 0x324   : > { %1488 = vst.msk [vmem:[%s3422_s8 + $0x80] sm:$0xff] %vm1471_vm12, %v3877_v13  ;;  %v1693_v56 = vmul.f32 %v3926_v0, %v2194_v17  ;;  %v1091_v29 = vshll.u32 %v1090_v34, 16 }
 0x325   : > { %v1716_v16 = vadd.f32 %v1715_v1, %v1685_v49  ;;  %v1566_v7 = vadd.s32 %v3190_v57, %v1533_v38 }
 0x327   : > { %v1717_v30 = vadd.f32 %v1716_v16, %v1686_v20  ;;  %vm1598_vm3 = vcmp.lt.s32.totalorder %v1566_v7, 512 }
 0x329   : > { %v1718_v27 = vadd.f32 %v1717_v30, %v1687_v5  ;;  %v3950_v30 = vsel %vm1598_vm3, 1.0, %v4248_v8 }
 0x32b   : > { %v1719_v15 = vadd.f32 %v1718_v27, %v1688_v12  ;;  %v3906_v18 = vpop.f32.mrf.mxu2  ;;  %v1132_v12 = vcvt.f32.s32 %v3691_v53 }
 0x32c   : > { %1489 = vst.msk [vmem:[%s3422_s8 + $0x88] sm:$0xff] %vm1471_vm12, %v3906_v18 }
 0x32d   : > { %v1720_v28 = vadd.f32 %v1719_v15, %v1689_v33 }
 0x32f   : > { %v1721_v36 = vadd.f32 %v1720_v28, %v1690_v47 }
 0x331   : > { %v1722_v31 = vadd.f32 %v1721_v36, %v1691_v54  ;;  %v1133_v54 = vshll.u32 %v1132_v12, 16 }
 0x333   : > { %v1723_v2 = vadd.f32 %v1722_v31, %v1692_v22  ;;  %v3932_v62 = vpop.f32.mrf.mxu2 }
 0x334   : > { %1490 = vst.msk [vmem:[%s3422_s8 + $0x90] sm:$0xff] %vm1471_vm12, %v3932_v62 }
 0x335   : > { %v1724_v19 = vadd.f32 %v1723_v2, %v1693_v56  ;;  %v1399_v49 = vpop.f32.mrf.mxu1 }
 0x336   : > { %1480 = vst.msk [vmem:[%s3422_s8 + $0x40] sm:$0xff] %vm1471_vm12, %v1399_v49  ;;  %v1745_v1 = vsub.f32 %v1399_v49, %v2425_v39 }
 0x338   : > { %v1777_v25 = vmul.f32 %v1745_v1, %v1745_v1  ;;  %v1088_v20 = vpop.xlane.xlu2 %1087 }
 0x339   : > { %v1089_v16 = vcvt.f32.s32 %v1088_v20 }
 0x33a   : > { %v1809_v52 = vmul.f32 %v3584_v58, %v1777_v25  ;;  %v2426_v58 = vld [vmem:[%s2647_s19 + $0x48] sm:$0xff] }
 0x33b   : > { %v1092_v42 = vadd.s32 %v1091_v29, %v1089_v16  ;;  %v3943_v5 = vpop.f32.mrf.mxu2  ;;  %v2428_v29 = vld [vmem:[%s2647_s19 + $0x58] sm:$0xff] }
 0x33c   : > { %v1848_v24 = vsel %vm1471_vm12, %v1809_v52, 0.0  ;;  %1491 = vst.msk [vmem:[%s3422_s8 + $0x98] sm:$0xff] %vm1471_vm12, %v3943_v5 }
 0x33d   : > { %v1849_v27 = vadd.f32 %v1848_v24, %v3848_v9  ;;  %1337 = vst.msk [vmem:[%s3171_s17 + $0xd8] sm:$0xff] %vm1309_vm9, %v1092_v42  ;;  %v1402_v44 = vpop.f32.mrf.mxu1  ;;  %vm1176_vm4 = vcmp.eq.s32.totalorder %v2786_v59, %v1092_v42 }
 0x33e   : > { %1481 = vst.msk [vmem:[%s3422_s8 + $0x48] sm:$0xff] %vm1471_vm12, %v1402_v44  ;;  %v1746_v33 = vsub.f32 %v1402_v44, %v2426_v58  ;;  %v2195_v15 = vsel %vm1176_vm4, 1.0, %v4248_v8  ;;  %2227 = vmatmul.msk.f32.gmra.mxu2 %vm1176_vm4, %v4250_v6  ;;  %v2429_v44 = vld [vmem:[%s2647_s19 + $0x60] sm:$0xff] }
 0x33f   : > { %v2311_v47 = vpack.c.bf16 %v2195_v15, %v2194_v17  ;;  %v1694_v53 = vmul.f32 %v3950_v30, %v2195_v15 }
 0x340   : > { %v1778_v9 = vmul.f32 %v1746_v33, %v1746_v33  ;;  %v1130_v28 = vpop.xlane.xlu0 %1129 }
 0x341   : > { %2331 = vst [vmem:[%s3244_s22 + $0x68] sm:$0xff] %v2311_v47   ;;  %v3964_v36 = vadd.f32 %v1724_v19, %v1694_v53  ;;  %v1131_v22 = vcvt.f32.s32 %v1130_v28  ;;  %v1535_v28 = vadd.s32 232, %v3180_v46 }
 0x342   : > { %v1810_v31 = vmul.f32 %v3633_v43, %v1778_v9  ;;  %v2427_v43 = vld [vmem:[%s2647_s19 + $0x50] sm:$0xff]  ;;  %v1534_v9 = vadd.s32 224, %v3180_v46 }
 0x343   : > { %v3967_v38 = vadd.s32 %v1133_v54, %v1131_v22  ;;  %v3969_v2 = vpop.f32.mrf.mxu2  ;;  %v1104_v54 = vcvt.f32.s32 %v3725_v40  ;;  %v1536_v22 = vadd.s32 240, %v3180_v46 }
 0x344   : > { %v1850_v17 = vsel %vm1471_vm12, %v1810_v31, 0.0  ;;  %1492 = vst.msk [vmem:[%s3422_s8 + $0xa0] sm:$0xff] %vm1471_vm12, %v3969_v2  ;;  %v1568_v31 = vadd.s32 %v3190_v57, %v1535_v28 }
 0x345   : > { %v1851_v56 = vadd.f32 %v1850_v17, %v1849_v27  ;;  %1340 = vst.msk [vmem:[%s3171_s17 + $0xf0] sm:$0xff] %vm1309_vm9, %v3967_v38  ;;  %v1405_v34 = vpop.f32.mrf.mxu1  ;;  %vm1179_vm5 = vcmp.eq.s32.totalorder %v2786_v59, %v3967_v38  ;;  %v1105_v17 = vshll.u32 %v1104_v54, 16 }
 0x346   : > { %1482 = vst.msk [vmem:[%s3422_s8 + $0x50] sm:$0xff] %vm1471_vm12, %v1405_v34  ;;  %v1747_v19 = vsub.f32 %v1405_v34, %v2427_v43  ;;  %2230 = vmatmul.msk.f32.gmra.mxu3 %vm1179_vm5, %v4250_v6  ;;  %v1569_v34 = vadd.s32 %v3190_v57, %v1536_v22  ;;  %vm1600_vm7 = vcmp.lt.s32.totalorder %v1568_v31, 512 }
 0x348   : > { %v1779_v49 = vmul.f32 %v1747_v19, %v1747_v19  ;;  %v1537_v19 = vadd.s32 248, %v3180_v46  ;;  %vm1601_vm8 = vcmp.lt.s32.totalorder %v1569_v34, 512  ;;  %v2197_v46 = vsel %vm1178_vm10, 1.0, %v4248_v8 }
 0x349   : > { %v4047_v21 = vsel %vm1601_vm8, 1.0, %v4248_v8 }
 0x34a   : > { %v1811_v7 = vmul.f32 %v3653_v32, %v1779_v49 }
 0x34b   : > { %v3988_v39 = vpop.f32.mrf.mxu2 }
 0x34c   : > { %v1852_v1 = vsel %vm1471_vm12, %v1811_v7, 0.0  ;;  %1493 = vst.msk [vmem:[%s3422_s8 + $0xa8] sm:$0xff] %vm1471_vm12, %v3988_v39  ;;  %v1146_v7 = vcvt.f32.s32 %v3735_v11  ;;  %v4039_v11 = vsel %vm1600_vm7, 1.0, %v4248_v8 }
 0x34d   : > { %v1853_v25 = vadd.f32 %v1852_v1, %v1851_v56  ;;  %v1408_v20 = vpop.f32.mrf.mxu1  ;;  %v1570_v1 = vadd.s32 %v3190_v57, %v1537_v19 }
 0x34e   : > { %1483 = vst.msk [vmem:[%s3422_s8 + $0x58] sm:$0xff] %vm1471_vm12, %v1408_v20  ;;  %v1748_v16 = vsub.f32 %v1408_v20, %v2428_v29 }
 0x34f   : > { %vm1602_vm10 = vcmp.lt.s32.totalorder %v1570_v1, 512  ;;  %v2433_v1 = vld [vmem:[%s2647_s19 + $0x68] sm:$0xff] }
 0x350   : > { %v1780_v52 = vmul.f32 %v1748_v16, %v1748_v16  ;;  %v1147_v16 = vshll.u32 %v1146_v7, 16 }
 0x352   : > { %v1812_v42 = vmul.f32 %v3662_v61, %v1780_v52 }
 0x353   : > { %v3998_v32 = vpop.f32.mrf.mxu2 }
 0x354   : > { %v1854_v24 = vsel %vm1471_vm12, %v1812_v42, 0.0  ;;  %1494 = vst.msk [vmem:[%s3422_s8 + $0xb0] sm:$0xff] %vm1471_vm12, %v3998_v32 }
 0x355   : > { %v1855_v12 = vadd.f32 %v1854_v24, %v1853_v25  ;;  %v1411_v27 = vpop.f32.mrf.mxu1 }
 0x356   : > { %1484 = vst.msk [vmem:[%s3422_s8 + $0x60] sm:$0xff] %vm1471_vm12, %v1411_v27  ;;  %v1749_v58 = vsub.f32 %v1411_v27, %v2429_v44 }
 0x358   : > { %v1781_v33 = vmul.f32 %v1749_v58, %v1749_v58 }
 0x35a   : > { %v1813_v15 = vmul.f32 %v3674_v60, %v1781_v33  ;;  %v1567_v60 = vadd.s32 %v3190_v57, %v1534_v9  ;;  %v2198_v57 = vsel %vm1179_vm5, 1.0, %v4248_v8  ;;  %v4054_v33 = vsel %vm1602_vm10, 1.0, %v4248_v8 }
 0x35b   : > { %v4008_v47 = vpop.f32.mrf.mxu2  ;;  %v1697_v27 = vmul.f32 %v4047_v21, %v2198_v57 }
 0x35c   : > { %v1856_v61 = vsel %vm1471_vm12, %v1813_v15, 0.0  ;;  %1495 = vst.msk [vmem:[%s3422_s8 + $0xb8] sm:$0xff] %vm1471_vm12, %v4008_v47  ;;  %vm1599_vm6 = vcmp.lt.s32.totalorder %v1567_v60, 512 }
 0x35d   : > { %v4014_v53 = vadd.f32 %v1856_v61, %v1855_v12  ;;  %v4026_v40 = vsel %vm1599_vm6, 1.0, %v4248_v8  ;;  %v1696_v12 = vmul.f32 %v4039_v11, %v2197_v46 }
 0x36c   : > { %v1102_v56 = vpop.xlane.xlu1 %1101 }
 0x36d   : > { %v1103_v43 = vcvt.f32.s32 %v1102_v56  ;;  %v2431_v56 = vld [vmem:[%s2647_s19 + $0x78] sm:$0xff] }
 0x36e   : > { %v1752_v34 = vsub.f32 %v3739_v23, %v2431_v56  ;;  %v2440_v56 = vld [vmem:[%s2647_s19 + $0xb8] sm:$0xff] }
 0x36f   : > { %v1106_v49 = vadd.s32 %v1105_v17, %v1103_v43 }
 0x371   : > { %1338 = vst.msk [vmem:[%s3171_s17 + $0xe0] sm:$0xff] %vm1309_vm9, %v1106_v49  ;;  %vm1177_vm11 = vcmp.eq.s32.totalorder %v2786_v59, %v1106_v49  ;;  %v2432_v49 = vld [vmem:[%s2647_s19 + $0x80] sm:$0xff] }
 0x372   : > { %v2196_v25 = vsel %vm1177_vm11, 1.0, %v4248_v8  ;;  %2228 = vmatmul.msk.f32.gmra.mxu2 %vm1177_vm11, %v4250_v6  ;;  %v1753_v7 = vsub.f32 %v3877_v13, %v2432_v49  ;;  %v2441_v49 = vld [vmem:[%s2647_s19 + $0xc0] sm:$0xff] }
 0x373   : > { %v2314_v20 = vpack.c.bf16 %v2197_v46, %v2196_v25  ;;  %v1695_v29 = vmul.f32 %v4026_v40, %v2196_v25  ;;  %v1784_v25 = vmul.f32 %v1752_v34, %v1752_v34  ;;  %v1760_v34 = vsub.f32 %v4008_v47, %v2440_v56  ;;  %v2442_v47 = vld [vmem:[%s2647_s19 + $0xc8] sm:$0xff] }
 0x374   : > { %v1144_v52 = vpop.xlane.xlu2 %1143 }
 0x375   : > { %2332 = vst [vmem:[%s3244_s22 + $0x70] sm:$0xff] %v2314_v20   ;;  %v1726_v42 = vadd.f32 %v3964_v36, %v1695_v29  ;;  %v1145_v24 = vcvt.f32.s32 %v1144_v52 }
 0x377   : > { %v1148_v44 = vadd.s32 %v1147_v16, %v1145_v24  ;;  %v1727_v58 = vadd.f32 %v1726_v42, %v1696_v12  ;;  %v1785_v16 = vmul.f32 %v1753_v7, %v1753_v7  ;;  %v1816_v24 = vmul.f32 %v3817_v10, %v1784_v25 }
 0x378   : > { %v1792_v25 = vmul.f32 %v1760_v34, %v1760_v34 }
 0x379   : > { %1341 = vst.msk [vmem:[%s3171_s17 + $0xf8] sm:$0xff] %vm1309_vm9, %v1148_v44  ;;  %vm1180_vm13 = vcmp.eq.s32.totalorder %v2786_v59, %v1148_v44  ;;  %v1728_v38 = vadd.f32 %v1727_v58, %v1697_v27  ;;  %v2436_v27 = vld [vmem:[%s2647_s19 + $0x98] sm:$0xff] }
 0x37a   : > { %v2199_v36 = vsel %vm1180_vm13, 1.0, %v4248_v8  ;;  %2231 = vmatmul.msk.f32.gmra.mxu3 %vm1180_vm13, %v4250_v6  ;;  %v2430_v8 = vld [vmem:[%s2647_s19 + $0x70] sm:$0xff]  ;;  %v1756_v44 = vsub.f32 %v3943_v5, %v2436_v27 }
 0x37b   : > { %v2317_v15 = vpack.c.bf16 %v2199_v36, %v2198_v57  ;;  %v1698_v61 = vmul.f32 %v4054_v33, %v2199_v36  ;;  %v1751_v6 = vsub.f32 %v3730_v50, %v2430_v8  ;;  %v2434_v50 = vld [vmem:[%s2647_s19 + $0x88] sm:$0xff]  ;;  %v2435_v57 = vld [vmem:[%s2647_s19 + $0x90] sm:$0xff] }
 0x37c   : > { %v1754_v20 = vsub.f32 %v3906_v18, %v2434_v50  ;;  %v1755_v52 = vsub.f32 %v3932_v62, %v2435_v57  ;;  %v1817_v62 = vmul.f32 %v3829_v14, %v1785_v16  ;;  %v2443_v57 = vld [vmem:[%s2647_s19 + $0xd0] sm:$0xff] }
 0x37d   : > { %2333 = vst [vmem:[%s3244_s22 + $0x78] sm:$0xff] %v2317_v15   ;;  %v1729_v9 = vadd.f32 %v1728_v38, %v1698_v61  ;;  %v1783_v19 = vmul.f32 %v1751_v6, %v1751_v6  ;;  %v2437_v38 = vld [vmem:[%s2647_s19 + $0xa0] sm:$0xff]  ;;  %v1862_v15 = vsel %vm1471_vm12, %v1816_v24, 0.0  ;;  %v1788_v61 = vmul.f32 %v1756_v44, %v1756_v44 }
 0x37e   : > { %v1786_v12 = vmul.f32 %v1754_v20, %v1754_v20  ;;  %v1757_v10 = vsub.f32 %v3969_v2, %v2437_v38 }
 0x37f   : > { %v1730_v28 = vrot.slane %v1729_v9, 4  ;;  %v1815_v23 = vmul.f32 %v3795_v3, %v1783_v19  ;;  %v1820_v6 = vmul.f32 %v3873_v35, %v1788_v61 }
 0x380   : > { %v1818_v5 = vmul.f32 %v3839_v45, %v1786_v12 }
 0x381   : > { %v1731_v54 = vadd.f32 %v1730_v28, %v1729_v9  ;;  %v1860_v58 = vsel %vm1471_vm12, %v1815_v23, 0.0  ;;  %v2438_v9 = vld [vmem:[%s2647_s19 + $0xa8] sm:$0xff]  ;;  %v1870_v35 = vsel %vm1471_vm12, %v1820_v6, 0.0 }
 0x382   : > { %v1866_v8 = vsel %vm1471_vm12, %v1818_v5, 0.0 }
 0x383   : > { %v1732_v22 = vrot.slane %v1731_v54, 2 }
 0x385   : > { %v1733_v60 = vadd.f32 %v1732_v22, %v1731_v54  ;;  %v1864_v54 = vsel %vm1471_vm12, %v1817_v62, 0.0  ;;  %v1789_v22 = vmul.f32 %v1757_v10, %v1757_v10 }
 0x387   : > { %v1734_v59 = vrot.slane %v1733_v60, 1 }
 0x389   : > { %v1735_v31 = vadd.f32 %v1734_v59, %v1733_v60  ;;  %v2439_v60 = vld [vmem:[%s2647_s19 + $0xb0] sm:$0xff] }
 0x38a   : > { %v1759_v2 = vsub.f32 %v3998_v32, %v2439_v60  ;;  %v2447_v60 = vld [vmem:[%s2647_s19 + $0xe0] sm:$0xff] }
 0x38b   : > { %1736 = vst [vmem:[%s4229_s16] sm:$0x1] %v1735_v31 }
 0x38c   : > { %v1791_v19 = vmul.f32 %v1759_v2, %v1759_v2 }
 0x38e   : > { %v1823_v23 = vmul.f32 %v3896_v51, %v1791_v19 }
 0x393   : > { %v1447_v17 = vpop.f32.mrf.mxu2 }
 0x394   : > { %1496 = vst.msk [vmem:[%s3422_s8 + $0xc0] sm:$0xff] %vm1471_vm12, %v1447_v17  ;;  %v1761_v7 = vsub.f32 %v1447_v17, %v2441_v49  ;;  %v1824_v17 = vmul.f32 %v3902_v4, %v1792_v25 }
 0x395   : > { %v1414_v43 = vpop.f32.mrf.mxu1 }
 0x396   : > { %1485 = vst.msk [vmem:[%s3422_s8 + $0x68] sm:$0xff] %vm1471_vm12, %v1414_v43  ;;  %v1750_v46 = vsub.f32 %v1414_v43, %v2433_v1  ;;  %v1821_v43 = vmul.f32 %v3880_v48, %v1789_v22  ;;  %v1793_v16 = vmul.f32 %v1761_v7, %v1761_v7  ;;  %v1878_v51 = vsel %vm1471_vm12, %v1824_v17, 0.0 }
 0x398   : > { %v1782_v29 = vmul.f32 %v1750_v46, %v1750_v46 }
 0x39a   : > { %v1814_v13 = vmul.f32 %v3792_v26, %v1782_v29  ;;  %v1787_v26 = vmul.f32 %v1755_v52, %v1755_v52  ;;  %v1872_v29 = vsel %vm1471_vm12, %v1821_v43, 0.0  ;;  %v2448_v43 = vld [vmem:[%s2647_s19 + $0xf8] sm:$0xff] }
 0x39b   : > { %v1450_v42 = vpop.f32.mrf.mxu2 }
 0x39c   : > { %v1858_v18 = vsel %vm1471_vm12, %v1814_v13, 0.0  ;;  %1497 = vst.msk [vmem:[%s3422_s8 + $0xc8] sm:$0xff] %vm1471_vm12, %v1450_v42  ;;  %v1819_v14 = vmul.f32 %v3799_v41, %v1787_v26  ;;  %v1762_v50 = vsub.f32 %v1450_v42, %v2442_v47  ;;  %v1825_v42 = vmul.f32 %v3909_v63, %v1793_v16 }
 0x39d   : > { %v1859_v3 = vadd.f32 %v1858_v18, %v4014_v53  ;;  %v1758_v53 = vsub.f32 %v3988_v39, %v2438_v9 }
 0x39e   : > { %v1868_v32 = vsel %vm1471_vm12, %v1819_v14, 0.0  ;;  %v1794_v24 = vmul.f32 %v1762_v50, %v1762_v50  ;;  %v2446_v14 = vld [vmem:[%s2647_s19 + $0xf0] sm:$0xff] }
 0x39f   : > { %v1861_v36 = vadd.f32 %v1860_v58, %v1859_v3  ;;  %v1790_v39 = vmul.f32 %v1758_v53, %v1758_v53  ;;  %v1880_v58 = vsel %vm1471_vm12, %v1825_v42, 0.0 }
 0x3a0   : > { %v1826_v18 = vmul.f32 %v3917_v37, %v1794_v24 }
 0x3a1   : > { %v1863_v28 = vadd.f32 %v1862_v15, %v1861_v36  ;;  %v1822_v46 = vmul.f32 %v3890_v55, %v1790_v39  ;;  %v1876_v55 = vsel %vm1471_vm12, %v1823_v23, 0.0  ;;  %v2444_v15 = vld [vmem:[%s2647_s19 + $0xd8] sm:$0xff] }
 0x3a2   : > { %v1882_v26 = vsel %vm1471_vm12, %v1826_v18, 0.0 }
 0x3a3   : > { %v1865_v59 = vadd.f32 %v1864_v54, %v1863_v28  ;;  %v1453_v31 = vpop.f32.mrf.mxu2  ;;  %v1462_v45 = vpop.f32.mrf.mxu3  ;;  %v1874_v13 = vsel %vm1471_vm12, %v1822_v46, 0.0 }
 0x3a4   : > { %1498 = vst.msk [vmem:[%s3422_s8 + $0xd0] sm:$0xff] %vm1471_vm12, %v1453_v31  ;;  %v1763_v52 = vsub.f32 %v1453_v31, %v2443_v57 }
 0x3a5   : > { %v1867_v41 = vadd.f32 %v1866_v8, %v1865_v59  ;;  %1501 = vst.msk [vmem:[%s3422_s8 + $0xe8] sm:$0xff] %vm1471_vm12, %v1462_v45 }
 0x3a6   : > { %v1795_v27 = vmul.f32 %v1763_v52, %v1763_v52 }
 0x3a7   : > { %v1869_v1 = vadd.f32 %v1868_v32, %v1867_v41 }
 0x3a8   : > { %v1827_v4 = vmul.f32 %v3926_v0, %v1795_v27  ;;  %v2445_v0 = vld [vmem:[%s2647_s19 + $0xe8] sm:$0xff] }
 0x3a9   : > { %v1871_v20 = vadd.f32 %v1870_v35, %v1869_v1  ;;  %v1766_v9 = vsub.f32 %v1462_v45, %v2445_v0 }
 0x3aa   : > { %v1884_v63 = vsel %vm1471_vm12, %v1827_v4, 0.0 }
 0x3ab   : > { %v1873_v48 = vadd.f32 %v1872_v29, %v1871_v20  ;;  %v1798_v54 = vmul.f32 %v1766_v9, %v1766_v9 }
 0x3ad   : > { %v1875_v12 = vadd.f32 %v1874_v13, %v1873_v48  ;;  %v1830_v8 = vmul.f32 %v4039_v11, %v1798_v54 }
 0x3af   : > { %v1877_v44 = vadd.f32 %v1876_v55, %v1875_v12  ;;  %v1890_v41 = vsel %vm1471_vm12, %v1830_v8, 0.0 }
 0x3b1   : > { %v1879_v3 = vadd.f32 %v1878_v51, %v1877_v44 }
 0x3b3   : > { %v1881_v62 = vadd.f32 %v1880_v58, %v1879_v3 }
 0x3b5   : > { %v1883_v38 = vadd.f32 %v1882_v26, %v1881_v62 }
 0x3b7   : > { %v1885_v10 = vadd.f32 %v1884_v63, %v1883_v38 }
 0x3c1   : > { %v1456_v36 = vpop.f32.mrf.mxu2 }
 0x3c2   : > { %1499 = vst.msk [vmem:[%s3422_s8 + $0xd8] sm:$0xff] %vm1471_vm12, %v1456_v36  ;;  %v1764_v5 = vsub.f32 %v1456_v36, %v2444_v15 }
 0x3c4   : > { %v1796_v61 = vmul.f32 %v1764_v5, %v1764_v5 }
 0x3c6   : > { %v1828_v53 = vmul.f32 %v3950_v30, %v1796_v61 }
 0x3c8   : > { %v1886_v59 = vsel %vm1471_vm12, %v1828_v53, 0.0 }
 0x3c9   : > { %v1465_v37 = vpop.f32.mrf.mxu3  ;;  %v1887_v39 = vadd.f32 %v1886_v59, %v1885_v10 }
 0x3ca   : > { %1502 = vst.msk [vmem:[%s3422_s8 + $0xf0] sm:$0xff] %vm1471_vm12, %v1465_v37  ;;  %v1767_v22 = vsub.f32 %v1465_v37, %v2446_v14 }
 0x3cc   : > { %v1799_v6 = vmul.f32 %v1767_v22, %v1767_v22 }
 0x3ce   : > { %v1831_v32 = vmul.f32 %v4047_v21, %v1799_v6 }
 0x3d0   : > { %v1892_v7 = vsel %vm1471_vm12, %v1831_v32, 0.0 }
 0x3f5   : > { %v1459_v28 = vpop.f32.mrf.mxu2 }
 0x3f6   : > { %1500 = vst.msk [vmem:[%s3422_s8 + $0xe0] sm:$0xff] %vm1471_vm12, %v1459_v28  ;;  %v1765_v2 = vsub.f32 %v1459_v28, %v2447_v60 }
 0x3f8   : > { %v1797_v31 = vmul.f32 %v1765_v2, %v1765_v2 }
 0x3fa   : > { %v1829_v45 = vmul.f32 %v4026_v40, %v1797_v31 }
 0x3fc   : > { %v1888_v30 = vsel %vm1471_vm12, %v1829_v45, 0.0 }
 0x3fd   : > { %v1889_v56 = vadd.f32 %v1888_v30, %v1887_v39  ;;  %v1468_v34 = vpop.f32.mrf.mxu3 }
 0x3fe   : > { %1503 = vst.msk [vmem:[%s3422_s8 + $0xf8] sm:$0xff] %vm1471_vm12, %v1468_v34  ;;  %v1768_v19 = vsub.f32 %v1468_v34, %v2448_v43  ;;  %s2463_s8 = sshra.s32 %s1945_s23, 4  ;;  %s2464_s8 = int_to_ptr.hbm [resolvable:$true] %s2463_s8 }
 0x3ff   : > { %v1891_v11 = vadd.f32 %v1890_v41, %v1889_v56  ;;  %s2465_s16 = scalar_lea.hbm %s2464_s8, 128  ;;  %p2470_p0 = scmp.lt.s32.totalorder %s2464_s8, %s4211_s4 }
 0x400   : > { %v1800_v49 = vmul.f32 %v1768_v19, %v1768_v19  ;;  %p2466_p11 = scmp.ne.s32.totalorder %s2464_s8, %s2465_s16  ;;  %p2471_p1 = scmp.lt.s32.totalorder %s2469_s9, %s2465_s16 }
 0x401   : > { %v1893_v1 = vadd.f32 %v1892_v7, %v1891_v11 }
 0x402   : > { %v1832_v40 = vmul.f32 %v4054_v33, %v1800_v49  ;;  %p2467_p12 = pnand %p2466_p11, %p2627_p5  ;;  %p2472_p2 = por %p2471_p1, %p2470_p0 }
 0x404   : > { %v1894_v35 = vsel %vm1471_vm12, %v1832_v40, 0.0  ;;  %p2468_p13 = pneg %p2467_p12 }
 0x405   : > { %v1895_v46 = vadd.f32 %v1894_v35, %v1893_v1 }
 0x406   : > { %p2473_p3 = pnand %p2472_p2, %p2468_p13 }
 0x407   : > { %1896 = vadd.xlane.f32.xlu0 %v1895_v46 }
 0x408   : > { %2476 = shalt.err (!%p2473_p3)
}
 0x409   : > { %s2547_s22 = smov 64   ;;  %s2548_s15 = smov 4  }
 0x40a   : > { %2369 = dma.vmem_to_hbm [thread:$0]  (%p2627_p5), %s1943_s21, 2048, %s1945_s23, %s1914_s29, %s2547_s22, %s2547_s22, %s2548_s15  }
 0x40b   : > { %s4261_s19 = scalar_lea.vmem [#allocation4], %s3207_s20  ;;  %s1964_s0 = sshll.u32 %s1960_s18, 4  ;;  %s1965_s0 = int_to_ptr.hbm [resolvable:$true] %s1964_s0 }
 0x40c   : > { %s1962_s17 = sshll.u32 %s4261_s19, 4  ;;  %s1924_s1 = scalar_lea.sflag [#allocation5], %s3207_s20  ;;  %s1963_s17 = int_to_ptr.vmem [resolvable:$true] %s1962_s17 }
 0x40d   : > { %s2491_s13 = sshra.s32 %s1965_s0, 4  ;;  %s2497_s14 = scalar_lea.hbm %s4213_s6, 2  ;;  %s2492_s13 = int_to_ptr.hbm [resolvable:$true] %s2491_s13 }
 0x40e   : > { %s2493_s16 = scalar_lea.hbm %s2492_s13, 1  ;;  %p2498_p9 = scmp.lt.s32.totalorder %s2492_s13, %s4213_s6 }
 0x40f   : > { %p2494_p4 = scmp.ne.s32.totalorder %s2492_s13, %s2493_s16  ;;  %p2499_p10 = scmp.lt.s32.totalorder %s2497_s14, %s2493_s16 }
 0x411   : > { %p2495_p7 = pnand %p2494_p4, %p2627_p5  ;;  %p2500_p11 = por %p2499_p10, %p2498_p9 }
 0x413   : > { %p2496_p8 = pneg %p2495_p7 }
 0x415   : > { %p2501_p12 = pnand %p2500_p11, %p2496_p8 }
 0x417   : > { %2504 = shalt.err (!%p2501_p12)
}
 0x418   : > { %2370 = dma.vmem_to_hbm [thread:$0]  (%p2627_p5), %s1963_s17, 16, %s1965_s0, %s1924_s1   ;;  %vm1906_vm9 = vcmask 0  }
 0x419   : > { %p321_p13 = scmp.lt.s32.totalorder %s2610_s28, 1 }
 0x41b   : > { %s4269_s28 = smov (!%p321_p13, %s2610_s28), 1 }
 0x41c   : > { %s323_s20 = scalar_lea.vmem %s4214_s7, %s4269_s28 }
 0x47a   : > { %v1897_v21 = vpop.xlane.xlu0 %1896 }
 0x47b   : > { %v1898_v33 = vrot.slane %v1897_v21, 4 }
 0x47d   : > { %v1899_v25 = vadd.f32 %v1898_v33, %v1897_v21 }
 0x47f   : > { %v1900_v47 = vrot.slane %v1899_v25, 2 }
 0x481   : > { %v1901_v50 = vadd.f32 %v1900_v47, %v1899_v25 }
 0x483   : > { %v1902_v20 = vrot.slane %v1901_v50, 1 }
 0x485   : > { %v1903_v29 = vadd.f32 %v1902_v20, %v1901_v50 }
 0x487   : > { %2367 = vpush %v1903_v29 }
 0x4b8   : > { %s2368_s18 = spop %2367 }
 0x4b9   : > { %v1905_v23 = vstv %s2368_s18 }
 0x4ba   : > { %1907 = vst.msk [vmem:[%s323_s20] sm:$0x1] %vm1906_vm9, %v1905_v23 }
 0x4bb PF: > { %p2380_p5 = scmp.ge.s32.totalorder %s2543_s27, 2  ;;  %s1987_s11 = sand.u32 1, %s2531_s24  }
 0x4bc   : > { %s1988_s21 = scalar_lea.sflag [#allocation3], %s1987_s11 }
 0x4bd   : > { %p2374_p0 = pnand %p2380_p5, %p2631_p6 }
 0x4bf   : > { %p2375_p1 = pneg %p2374_p0 }
 0x4c1   : > { %2522 = dma.done.wait (%p2375_p1), %s1988_s21, 2048  }
 0x4c2   : > { %2524 = vsyncadd (%p2375_p1), %s1988_s21, 4294965248  ;;  %s2006_s23 = scalar_lea.sflag [#allocation5], %s1987_s11 }
 0x4c3   : > { %2526 = dma.done.wait (%p2375_p1), %s2006_s23, 16  }
 0x4c4   : > { %2528 = vsyncadd (%p2375_p1), %s2006_s23, 4294967280  ;;  %p21_p2 = scmp.ge.s32.totalorder %s2614_s30, 4   ;;  %s4262_s24 = smov %s2535_s25 }
 0x4c5   : > { %s4263_s25 = smov %s2539_s26  ;;  %s4264_s26 = smov %s2625_s10 }
 0x4c6   : > { %s4265_s27 = smov %s2614_s30  ;;  %23 = sbr.rel (!%p21_p2) target bundleno = 10 (0xa), region = 120 }
 0x4cb   :  { %2017 = vsyncpa [#allocation3], 1 }
 0x4cc   :  { %2019 = vsyncpa [#allocation3 + $0x1], 1 }
 0x4cd   :  { %2020 = vsyncpa [#allocation5], 1 }
 0x4ce   :  { %2022 = vsyncpa [#allocation5 + $0x1], 1 }

</bundles_post_ra>
